<compile_context>
chip_gen: v7x
topology: tpu7x:2x2x1
jax: 0.10.0
libtpu: 0.0.40
codegen_flags: <defaults>
</compile_context>

<pallas_src>
import functools
import numpy as np

import jax
import jax.numpy as jnp
from jax.experimental import pallas as pl
from jax.experimental.pallas import tpu as pltpu

# ---------------- Config (synthetic, small) ----------------
FEATURE_LEN = 16          # Config.FEATURE_LEN
MODEL_DIM   = 32          # Config.MODEL_DIM
NUM_LAYERS  = 2           # Config.NUM_LAYERS
DROPOUT     = 0.1         # Config.DROPOUT (identity in eval mode)
DIM_FF      = MODEL_DIM * 4
NUM_HEADS   = max(2, MODEL_DIM // 16)
HEAD_DIM    = MODEL_DIM // NUM_HEADS
HALF_DIM    = MODEL_DIM // 2
LN_EPS      = 1e-5
BN_EPS      = 1e-5
BATCH       = 2
BATCH_TILE_MAX = 8        # max samples folded into the sublane axis per grid step
ATT_SCALE   = 1.0 / float(np.sqrt(HEAD_DIM))

# ---------------- packed-parameter layout ----------------
PACK_W = 128  # lane width of both parameter packs

# weight pack row offsets (all multiples of 8 -> clean sublane slices)
_R_SCALE  = 0                                        # (F, D)  fused BN*emb scale
_R_OFFSET = _R_SCALE + FEATURE_LEN                   # (F, D)  fused BN*emb offset
_R_POS    = _R_OFFSET + FEATURE_LEN                  # (F, D)  positional embedding
_R_AIW    = _R_POS + FEATURE_LEN                     # + l*D   (D, 3D) in_proj^T
_R_AOW    = _R_AIW + NUM_LAYERS * MODEL_DIM          # + l*D   (D, D)  out_proj^T
_R_F1W    = _R_AOW + NUM_LAYERS * MODEL_DIM          # + l*D   (D, FF) ffn1^T
_R_F2W    = _R_F1W + NUM_LAYERS * MODEL_DIM          # + l*FF  (FF, D) ffn2^T
_R_CW1    = _R_F2W + NUM_LAYERS * DIM_FF             # (D, D//2)
_R_CW2    = _R_CW1 + MODEL_DIM                       # (D//2, 1)
_WP_ROWS  = _R_CW2 + HALF_DIM                        # = 544

# vector pack rows (one (1, <=128) row each)
_V_ELN_G, _V_ELN_B, _V_CG, _V_CB, _V_CB1, _V_CB2 = range(6)
_V_LAYER  = 6             # + 8*l: [aib, aob, l1g, l1b, f1b, f2b, l2g, l2b]
_VP_ROWS  = _V_LAYER + 8 * NUM_LAYERS                # = 22
_VP_ROWS_PAD = ((_VP_ROWS + 7) // 8) * 8             # = 24


# ---------------- shared math helpers ----------------
def _gelu_tanh(x):
    # tanh-approximation GELU: the heavy op (tanh) runs on the EUP slot.
    c = 0.7978845608028654  # sqrt(2/pi)
    return 0.5 * x * (1.0 + jnp.tanh(c * (x + 0.044715 * x * x * x)))


def _gelu_exact(x):
    # exact erf-based GELU (torch.nn.GELU default) -- reference only.
    return 0.5 * x * (1.0 + jax.lax.erf(x * (1.0 / np.sqrt(2.0))))


def _layer_norm(x, g, b):
    mu = jnp.mean(x, axis=-1, keepdims=True)
    var = jnp.mean((x - mu) ** 2, axis=-1, keepdims=True)
    return (x - mu) * jax.lax.rsqrt(var + LN_EPS) * g + b


def _softmax_ref(x):
    m = jnp.max(x, axis=-1, keepdims=True)
    e = jnp.exp(x - m)
    return e / jnp.sum(e, axis=-1, keepdims=True)


def _softmax_kernel(x):
    # last-axis softmax; approx reciprocal runs on the (otherwise idle) EUP slot
    m = jnp.max(x, axis=-1, keepdims=True)
    e = jnp.exp(x - m)
    return e * pl.reciprocal(jnp.sum(e, axis=-1, keepdims=True), approx=True)


# ---------------- Pallas kernel ----------------
def _model_kernel(BT, x_ref, wp_ref, vp_ref, out_ref):
    F, D, HD, H = FEATURE_LEN, MODEL_DIM, HEAD_DIM, NUM_HEADS
    FF, D2, L = DIM_FF, HALF_DIM, NUM_LAYERS
    N = BT * F                       # batch folded into the sublane axis

    def mm(a, b):
        return jnp.dot(a, b, preferred_element_type=jnp.float32)

    def qkt(a, b):                   # a @ b^T via dot_general (no explicit transpose)
        return jax.lax.dot_general(a, b, (((1,), (1,)), ((), ())),
                                   preferred_element_type=jnp.float32)

    def W(r0, nrows, ncols):         # static slice of the packed weight matrix
        return wp_ref[r0:r0 + nrows, 0:ncols]

    def V(r, ncols):                 # one packed row vector -> (1, ncols)
        return vp_ref[r:r + 1, 0:ncols]

    # block-diagonal additive masks -- only needed when more than one sample
    # shares the folded sublane axis (at the test config BT == 1: no mask).
    if BT > 1:
        rblk = jax.lax.broadcasted_iota(jnp.int32, (N, N), 0) // F
        cblk = jax.lax.broadcasted_iota(jnp.int32, (N, N), 1) // F
        full_mask = jnp.where(rblk == cblk, 0.0, -1e30)
        prow = jax.lax.broadcasted_iota(jnp.int32, (BT, N), 0)
        pcol = jax.lax.broadcasted_iota(jnp.int32, (BT, N), 1) // F
        pool_mask = jnp.where(prow == pcol, 0.0, -1e30)

    # ---- fused BatchNorm(eval)+Linear(1,D) -> GELU -> LayerNorm -> +pos ----
    x = x_ref[...]                                           # (BT, F, 1)
    h = x * W(_R_SCALE, F, D) + W(_R_OFFSET, F, D)           # (BT, F, D)
    h = _gelu_tanh(h)
    h = _layer_norm(h, V(_V_ELN_G, D), V(_V_ELN_B, D))
    h = h + W(_R_POS, F, D)
    h2 = h.reshape(N, D)                                     # (N, D)

    # ---- full encoder layers (all tokens) except the last ----
    for l in range(L - 1):
        vb = _V_LAYER + 8 * l
        qkv = mm(h2, W(_R_AIW + l * D, D, 3 * D)) + V(vb + 0, 3 * D)   # (N, 3D)
        heads = []
        for n in range(H):
            q = qkv[:, n * HD:(n + 1) * HD]
            k = qkv[:, D + n * HD:D + (n + 1) * HD]
            v = qkv[:, 2 * D + n * HD:2 * D + (n + 1) * HD]
            s = qkt(q, k) * ATT_SCALE                        # (N, N)
            if BT > 1:
                s = s + full_mask
            heads.append(mm(_softmax_kernel(s), v))          # (N, HD)
        attn = mm(jnp.concatenate(heads, axis=-1),
                  W(_R_AOW + l * D, D, D)) + V(vb + 1, D)
        h2 = _layer_norm(h2 + attn, V(vb + 2, D), V(vb + 3, D))
        ff = jnp.maximum(mm(h2, W(_R_F1W + l * D, D, FF)) + V(vb + 4, FF), 0.0)
        ff = mm(ff, W(_R_F2W + l * FF, FF, D)) + V(vb + 5, D)
        h2 = _layer_norm(h2 + ff, V(vb + 6, D), V(vb + 7, D))

    # ---- last encoder layer: only token 0 per sample ('first' pooling) ----
    l = L - 1
    vb = _V_LAYER + 8 * l
    if BT == 1:
        h0 = h2[0:1, :]                                      # plain sublane slice
    else:
        sel = (jax.lax.broadcasted_iota(jnp.int32, (BT, N), 1)
               == F * jax.lax.broadcasted_iota(jnp.int32, (BT, N), 0)
               ).astype(jnp.float32)
        h0 = mm(sel, h2)                                     # one MXU "gather"

    aiw_l = W(_R_AIW + l * D, D, 3 * D)
    aib_l = V(vb + 0, 3 * D)
    q0 = mm(h0, aiw_l[:, 0:D]) + aib_l[:, 0:D]               # (BT, D)
    kv = mm(h2, aiw_l[:, D:3 * D]) + aib_l[:, D:3 * D]       # (N, 2D)
    heads = []
    for n in range(H):
        qn = q0[:, n * HD:(n + 1) * HD]
        kn = kv[:, n * HD:(n + 1) * HD]
        vn = kv[:, D + n * HD:D + (n + 1) * HD]
        s = qkt(qn, kn) * ATT_SCALE                          # (BT, N)
        if BT > 1:
            s = s + pool_mask
        heads.append(mm(_softmax_kernel(s), vn))             # (BT, HD)
    attn0 = mm(jnp.concatenate(heads, axis=-1),
               W(_R_AOW + l * D, D, D)) + V(vb + 1, D)
    r = _layer_norm(h0 + attn0, V(vb + 2, D), V(vb + 3, D))
    ff = jnp.maximum(mm(r, W(_R_F1W + l * D, D, FF)) + V(vb + 4, FF), 0.0)
    ff = mm(ff, W(_R_F2W + l * FF, FF, D)) + V(vb + 5, D)
    rep = _layer_norm(r + ff, V(vb + 6, D), V(vb + 7, D))    # (BT, D)

    # ---- classifier head ----
    rep = _layer_norm(rep, V(_V_CG, D), V(_V_CB, D))
    z = _gelu_tanh(mm(rep, W(_R_CW1, D, D2)) + V(_V_CB1, D2))   # (BT, D//2)
    logit = mm(z, W(_R_CW2, D2, 1)) + V(_V_CB2, 1)              # (BT, 1)
    out_ref[...] = logit.reshape(1, 1, BT)                      # lane-dense store


# ---------------- one-time parameter packing (hoisted out of forward) ----------------
def pack_params(params):
    """Fold BatchNorm(eval)+Linear(1,D) into (F,D) scale/offset and concatenate
    everything into two lane-padded arrays: weights (544,128), vectors (24,128)."""
    (bn_g, bn_b, emb_w, emb_b, eln_g, eln_b, pos,
     aiw, aib, aow, aob, l1g, l1b, f1w, f1b, f2w, f2b, l2g, l2b,
     cg, cb, cw1, cb1, cw2, cb2) = params
    L = NUM_LAYERS
    inv = 1.0 / np.sqrt(1.0 + BN_EPS)

    def pad_lanes(a):
        a = np.asarray(a, np.float32)
        if a.ndim == 1:
            a = a.reshape(1, -1)
        return np.pad(a, ((0, 0), (0, PACK_W - a.shape[-1])))

    scale = np.asarray(bn_g, np.float32) * inv * np.asarray(emb_w, np.float32)       # (F, D)
    offset = (np.asarray(bn_b, np.float32) * np.asarray(emb_w, np.float32)
              + np.asarray(emb_b, np.float32))                                       # (F, D)

    wrows = [pad_lanes(scale), pad_lanes(offset), pad_lanes(pos)]
    wrows += [pad_lanes(aiw[l]) for l in range(L)]
    wrows += [pad_lanes(aow[l]) for l in range(L)]
    wrows += [pad_lanes(f1w[l]) for l in range(L)]
    wrows += [pad_lanes(f2w[l]) for l in range(L)]
    wrows += [pad_lanes(cw1), pad_lanes(cw2)]
    wp = np.concatenate(wrows, axis=0)
    assert wp.shape == (_WP_ROWS, PACK_W)

    vrows = [eln_g, eln_b, cg, cb, cb1, cb2]
    for l in range(L):
        vrows += [aib[l], aob[l], l1g[l], l1b[l], f1b[l], f2b[l], l2g[l], l2b[l]]
    vp = np.concatenate([pad_lanes(v) for v in vrows], axis=0)
    vp = np.pad(vp, ((0, _VP_ROWS_PAD - vp.shape[0]), (0, 0)))
    assert vp.shape == (_VP_ROWS_PAD, PACK_W)
    return jnp.asarray(wp), jnp.asarray(vp)


# ---------------- wrapper ----------------
def _choose_batch_tile(B):
    # >= 2 grid steps whenever B >= 2 so dimension_semantics=("parallel",)
    # can span both v7x TensorCores; cap at 8 samples (= 128 folded sublanes).
    return max(1, min(BATCH_TILE_MAX, B // 2)) if B >= 2 else 1


@jax.jit
def model_forward(x, wp, vp):
    B = x.shape[0]
    BT = _choose_batch_tile(B)
    G = -(-B // BT)
    B_pad = G * BT
    if B_pad != B:
        x = jnp.pad(x, ((0, B_pad - B), (0, 0)))
    x3 = x.reshape(B_pad, FEATURE_LEN, 1)

    out = pl.pallas_call(
        functools.partial(_model_kernel, BT),
        out_shape=jax.ShapeDtypeStruct((G, 1, BT), jnp.float32),
        grid=(G,),
        in_specs=[
            pl.BlockSpec((BT, FEATURE_LEN, 1), lambda g: (g, 0, 0)),
            pl.BlockSpec((_WP_ROWS, PACK_W), lambda g: (0, 0)),
            pl.BlockSpec((_VP_ROWS_PAD, PACK_W), lambda g: (0, 0)),
        ],
        out_specs=pl.BlockSpec((1, 1, BT), lambda g: (g, 0, 0)),
        compiler_params=pltpu.CompilerParams(
            dimension_semantics=("parallel",)),   # shard batch tiles across TCs on v7x
    )(x3, wp, vp)
    return out.reshape(B_pad)[:B]


# ---------------- pure-JAX reference (original PyTorch param layout) ----------------
def _reference_single(x, bn_g, bn_b, emb_w, emb_b, eln_g, eln_b, pos,
                      aiw, aib, aow, aob, l1g, l1b, f1w, f1b, f2w, f2b, l2g, l2b,
                      cg, cb, cw1, cb1, cw2, cb2):
    """Single-sample forward. x: (F, 1). Returns (1, 1) logit."""
    h = x * (1.0 / np.sqrt(1.0 + BN_EPS)) * bn_g + bn_b                   # (F, 1)
    h = h * emb_w + emb_b                                                 # (F, D)
    h = _gelu_exact(h)
    h = _layer_norm(h, eln_g, eln_b)
    h = h + pos                                                           # (F, D)

    for l in range(NUM_LAYERS):
        qkv = jnp.dot(h, aiw[l], preferred_element_type=jnp.float32) + aib[l]
        heads = []
        for n in range(NUM_HEADS):
            q = qkv[:, n * HEAD_DIM:(n + 1) * HEAD_DIM]
            k = qkv[:, MODEL_DIM + n * HEAD_DIM: MODEL_DIM + (n + 1) * HEAD_DIM]
            v = qkv[:, 2 * MODEL_DIM + n * HEAD_DIM: 2 * MODEL_DIM + (n + 1) * HEAD_DIM]
            s = jax.lax.dot_general(q, k, (((1,), (1,)), ((), ())),
                                    preferred_element_type=jnp.float32) * ATT_SCALE
            heads.append(jnp.dot(_softmax_ref(s), v, preferred_element_type=jnp.float32))
        attn = jnp.concatenate(heads, axis=-1)
        attn = jnp.dot(attn, aow[l], preferred_element_type=jnp.float32) + aob[l]
        h = _layer_norm(h + attn, l1g[l], l1b[l])

        ff = jnp.dot(h, f1w[l], preferred_element_type=jnp.float32) + f1b[l]
        ff = jnp.maximum(ff, 0.0)
        ff = jnp.dot(ff, f2w[l], preferred_element_type=jnp.float32) + f2b[l]
        h = _layer_norm(h + ff, l2g[l], l2b[l])

    rep = h[0:1, :]
    rep = _layer_norm(rep, cg, cb)
    z = _gelu_exact(jnp.dot(rep, cw1, preferred_element_type=jnp.float32) + cb1)
    return jnp.dot(z, cw2, preferred_element_type=jnp.float32) + cb2


def reference_forward(x, params):
    x3 = x.reshape(x.shape[0], FEATURE_LEN, 1)
    with jax.default_matmul_precision("highest"):
        out = jax.vmap(lambda xi: _reference_single(xi, *params))(x3)
    return out[:, 0, 0]


# ---------------- deterministic parameter init (PyTorch-style layout) ----------------
def build_params(key):
    D, F, L, FF = MODEL_DIM, FEATURE_LEN, NUM_LAYERS, DIM_FF
    D2 = HALF_DIM
    keys = iter(jax.random.split(key, 32))

    def rnd(shape, scale=0.05):
        return (scale * jax.random.normal(next(keys), shape)).astype(jnp.float32)

    # Linear weights stored pre-transposed (in_features, out_features).
    params = [
        1.0 + rnd((F, 1)),          # bn gamma
        rnd((F, 1)),                # bn beta
        rnd((1, D), 0.5),           # feature_embedding Linear(1, D) weight^T
        rnd((1, D), 0.1),           # feature_embedding bias
        1.0 + rnd((1, D)),          # feature_embedding LayerNorm gamma
        rnd((1, D)),                # feature_embedding LayerNorm beta
        rnd((F, D), 1.0),           # positional embedding
        rnd((L, D, 3 * D), 0.05),   # attn in_proj weight^T
        rnd((L, 1, 3 * D), 0.02),   # attn in_proj bias
        rnd((L, D, D), 0.05),       # attn out_proj weight^T
        rnd((L, 1, D), 0.02),       # attn out_proj bias
        1.0 + rnd((L, 1, D)),       # norm1 gamma
        rnd((L, 1, D)),             # norm1 beta
        rnd((L, D, FF), 0.05),      # ffn linear1 weight^T
        rnd((L, 1, FF), 0.02),      # ffn linear1 bias
        rnd((L, FF, D), 0.05),      # ffn linear2 weight^T
        rnd((L, 1, D), 0.02),       # ffn linear2 bias
        1.0 + rnd((L, 1, D)),       # norm2 gamma
        rnd((L, 1, D)),             # norm2 beta
        1.0 + rnd((1, D)),          # classifier LayerNorm gamma
        rnd((1, D)),                # classifier LayerNorm beta
        rnd((D, D2), 0.1),          # classifier Linear(D, D//2) weight^T
        rnd((1, D2), 0.02),         # classifier Linear bias
        rnd((D2, 1), 0.1),          # classifier Linear(D//2, 1) weight^T
        rnd((1, 1), 0.02),          # classifier final bias
    ]
    return params


if __name__ == "__main__":
    key = jax.random.PRNGKey(0)
    kx, kp = jax.random.split(key)

    x = jax.random.normal(kx, (BATCH, FEATURE_LEN), dtype=jnp.float32)
    params = build_params(kp)
    wp, vp = pack_params(params)          # one-time prep, hoisted out of the forward path

    logits = jax.block_until_ready(model_forward(x, wp, vp))
    ref = jax.block_until_ready(reference_forward(x, params))

    # tolerance covers the EUP approx reciprocal (softmax) and tanh-GELU approximation
    np.testing.assert_allclose(np.asarray(logits), np.asarray(ref), rtol=1e-2, atol=1e-2)

    print("KERNEL_OK")
</pallas_src>

<mosaic_0001>
module attributes {stable_mosaic.version = 11 : i64} {
  func.func @_model_kernel(%arg0: i32, %arg1: memref<1x16x1xf32, #tpu.memory_space<vmem>>, %arg2: memref<544x128xf32, #tpu.memory_space<vmem>>, %arg3: memref<24x128xf32, #tpu.memory_space<vmem>>, %arg4: memref<1x1x1xf32, #tpu.memory_space<vmem>>) attributes {dimension_semantics = [#tpu.dimension_semantics<parallel>], iteration_bounds = array<i64: 2>, scalar_prefetch = 0 : i64, scratch_operands = 0 : i64, tpu.core_type = #tpu.core_type<tc>, window_params = [{transform_indices = @transform_0, window_bounds = array<i64: 1, 16, 1>}, {pipeline_mode = #tpu.pipeline_mode<synchronous>, transform_indices = @transform_1, window_bounds = array<i64: 544, 128>}, {pipeline_mode = #tpu.pipeline_mode<synchronous>, transform_indices = @transform_2, window_bounds = array<i64: 24, 128>}, {transform_indices = @transform_3, window_bounds = array<i64: 1, 1, 1>}]} {
    %c0 = arith.constant 0 : index
    %c0_0 = arith.constant 0 : index
    %c0_1 = arith.constant 0 : index
    %0 = vector.load %arg1[%c0, %c0_0, %c0_1] : memref<1x16x1xf32, #tpu.memory_space<vmem>>, vector<1x16x1xf32>
    %c0_2 = arith.constant 0 : index
    %c0_3 = arith.constant 0 : index
    %1 = vector.load %arg2[%c0_2, %c0_3] : memref<544x128xf32, #tpu.memory_space<vmem>>, vector<16x32xf32>
    %2 = vector.shape_cast %1 : vector<16x32xf32> to vector<1x16x32xf32>
    %3 = vector.broadcast %0 : vector<1x16x1xf32> to vector<1x16x32xf32>
    %4 = arith.mulf %3, %2 : vector<1x16x32xf32>
    %c16 = arith.constant 16 : index
    %c0_4 = arith.constant 0 : index
    %5 = vector.load %arg2[%c16, %c0_4] : memref<544x128xf32, #tpu.memory_space<vmem>>, vector<16x32xf32>
    %6 = vector.shape_cast %5 : vector<16x32xf32> to vector<1x16x32xf32>
    %7 = arith.addf %4, %6 : vector<1x16x32xf32>
    %cst = arith.constant 5.000000e-01 : f32
    %8 = vector.broadcast %cst : f32 to vector<1x16x32xf32>
    %9 = arith.mulf %8, %7 : vector<1x16x32xf32>
    %cst_5 = arith.constant 4.471500e-02 : f32
    %10 = vector.broadcast %cst_5 : f32 to vector<1x16x32xf32>
    %11 = arith.mulf %10, %7 : vector<1x16x32xf32>
    %12 = arith.mulf %11, %7 : vector<1x16x32xf32>
    %13 = arith.mulf %12, %7 : vector<1x16x32xf32>
    %14 = arith.addf %7, %13 : vector<1x16x32xf32>
    %cst_6 = arith.constant 0.797884583 : f32
    %15 = vector.broadcast %cst_6 : f32 to vector<1x16x32xf32>
    %16 = arith.mulf %15, %14 : vector<1x16x32xf32>
    %17 = math.tanh %16 : vector<1x16x32xf32>
    %cst_7 = arith.constant 1.000000e+00 : f32
    %18 = vector.broadcast %cst_7 : f32 to vector<1x16x32xf32>
    %19 = arith.addf %18, %17 : vector<1x16x32xf32>
    %20 = arith.mulf %9, %19 : vector<1x16x32xf32>
    %c0_8 = arith.constant 0 : index
    %c0_9 = arith.constant 0 : index
    %21 = vector.load %arg3[%c0_8, %c0_9] : memref<24x128xf32, #tpu.memory_space<vmem>>, vector<1x32xf32>
    %c1 = arith.constant 1 : index
    %c0_10 = arith.constant 0 : index
    %22 = vector.load %arg3[%c1, %c0_10] : memref<24x128xf32, #tpu.memory_space<vmem>>, vector<1x32xf32>
    %cst_11 = arith.constant dense<0.000000e+00> : vector<1x16xf32>
    %23 = vector.multi_reduction <add>, %20, %cst_11 [2] : vector<1x16x32xf32> to vector<1x16xf32>
    %24 = vector.shape_cast %23 : vector<1x16xf32> to vector<1x16x1xf32>
    %cst_12 = arith.constant 3.200000e+01 : f32
    %25 = vector.broadcast %cst_12 : f32 to vector<1x16x1xf32>
    %26 = arith.divf %24, %25 : vector<1x16x1xf32>
    %27 = vector.broadcast %26 : vector<1x16x1xf32> to vector<1x16x32xf32>
    %28 = arith.subf %20, %27 : vector<1x16x32xf32>
    %29 = arith.mulf %28, %28 : vector<1x16x32xf32>
    %cst_13 = arith.constant dense<0.000000e+00> : vector<1x16xf32>
    %30 = vector.multi_reduction <add>, %29, %cst_13 [2] : vector<1x16x32xf32> to vector<1x16xf32>
    %31 = vector.shape_cast %30 : vector<1x16xf32> to vector<1x16x1xf32>
    %cst_14 = arith.constant 3.200000e+01 : f32
    %32 = vector.broadcast %cst_14 : f32 to vector<1x16x1xf32>
    %33 = arith.divf %31, %32 : vector<1x16x1xf32>
    %34 = vector.broadcast %26 : vector<1x16x1xf32> to vector<1x16x32xf32>
    %35 = arith.subf %20, %34 : vector<1x16x32xf32>
    %cst_15 = arith.constant 9.99999974E-6 : f32
    %36 = vector.broadcast %cst_15 : f32 to vector<1x16x1xf32>
    %37 = arith.addf %33, %36 : vector<1x16x1xf32>
    %38 = math.rsqrt %37 : vector<1x16x1xf32>
    %39 = vector.broadcast %38 : vector<1x16x1xf32> to vector<1x16x32xf32>
    %40 = arith.mulf %35, %39 : vector<1x16x32xf32>
    %41 = vector.shape_cast %21 : vector<1x32xf32> to vector<1x1x32xf32>
    %42 = vector.broadcast %41 : vector<1x1x32xf32> to vector<1x16x32xf32>
    %43 = arith.mulf %40, %42 : vector<1x16x32xf32>
    %44 = vector.shape_cast %22 : vector<1x32xf32> to vector<1x1x32xf32>
    %45 = vector.broadcast %44 : vector<1x1x32xf32> to vector<1x16x32xf32>
    %46 = arith.addf %43, %45 : vector<1x16x32xf32>
    %c32 = arith.constant 32 : index
    %c0_16 = arith.constant 0 : index
    %47 = vector.load %arg2[%c32, %c0_16] : memref<544x128xf32, #tpu.memory_space<vmem>>, vector<16x32xf32>
    %48 = vector.shape_cast %47 : vector<16x32xf32> to vector<1x16x32xf32>
    %49 = arith.addf %46, %48 : vector<1x16x32xf32>
    %50 = vector.shape_cast %49 : vector<1x16x32xf32> to vector<16x32xf32>
    %c48 = arith.constant 48 : index
    %c0_17 = arith.constant 0 : index
    %51 = vector.load %arg2[%c48, %c0_17] : memref<544x128xf32, #tpu.memory_space<vmem>>, vector<32x96xf32>
    %cst_18 = arith.constant dense<0.000000e+00> : vector<16x96xf32>
    %52 = tpu.matmul %50, %51, %cst_18 {dimension_numbers = #tpu.dot_dimension_numbers<[1], [0], [0], [1], [0, 0, 1, 1], [], []>} : vector<16x32xf32>, vector<32x96xf32>, vector<16x96xf32> -> vector<16x96xf32>
    %c6 = arith.constant 6 : index
    %c0_19 = arith.constant 0 : index
    %53 = vector.load %arg3[%c6, %c0_19] : memref<24x128xf32, #tpu.memory_space<vmem>>, vector<1x96xf32>
    %54 = vector.broadcast %53 : vector<1x96xf32> to vector<16x96xf32>
    %55 = arith.addf %52, %54 : vector<16x96xf32>
    %56 = vector.extract_strided_slice %55 {offsets = [0, 0], sizes = [16, 16], strides = [1, 1]} : vector<16x96xf32> to vector<16x16xf32>
    %57 = vector.extract_strided_slice %55 {offsets = [0, 32], sizes = [16, 16], strides = [1, 1]} : vector<16x96xf32> to vector<16x16xf32>
    %58 = vector.extract_strided_slice %55 {offsets = [0, 64], sizes = [16, 16], strides = [1, 1]} : vector<16x96xf32> to vector<16x16xf32>
    %cst_20 = arith.constant dense<0.000000e+00> : vector<16x16xf32>
    %59 = tpu.matmul %56, %57, %cst_20 {dimension_numbers = #tpu.dot_dimension_numbers<[1], [1], [0], [0], [0, 0, 1, 0], [], []>} : vector<16x16xf32>, vector<16x16xf32>, vector<16x16xf32> -> vector<16x16xf32>
    %cst_21 = arith.constant 2.500000e-01 : f32
    %60 = vector.broadcast %cst_21 : f32 to vector<16x16xf32>
    %61 = arith.mulf %59, %60 : vector<16x16xf32>
    %cst_22 = arith.constant dense<0xFF800000> : vector<16xf32>
    %62 = vector.multi_reduction <maximumf>, %61, %cst_22 [1] : vector<16x16xf32> to vector<16xf32>
    %63 = vector.shape_cast %62 : vector<16xf32> to vector<16x1xf32>
    %64 = vector.broadcast %63 : vector<16x1xf32> to vector<16x16xf32>
    %65 = arith.subf %61, %64 : vector<16x16xf32>
    %66 = math.exp %65 : vector<16x16xf32>
    %cst_23 = arith.constant dense<0.000000e+00> : vector<16xf32>
    %67 = vector.multi_reduction <add>, %66, %cst_23 [1] : vector<16x16xf32> to vector<16xf32>
    %68 = vector.shape_cast %67 : vector<16xf32> to vector<16x1xf32>
    %69 = tpu.reciprocal %68 {approx = true} : vector<16x1xf32> -> vector<16x1xf32>
    %70 = vector.broadcast %69 : vector<16x1xf32> to vector<16x16xf32>
    %71 = arith.mulf %66, %70 : vector<16x16xf32>
    %cst_24 = arith.constant dense<0.000000e+00> : vector<16x16xf32>
    %72 = tpu.matmul %71, %58, %cst_24 {dimension_numbers = #tpu.dot_dimension_numbers<[1], [0], [0], [1], [0, 0, 1, 1], [], []>} : vector<16x16xf32>, vector<16x16xf32>, vector<16x16xf32> -> vector<16x16xf32>
    %73 = vector.extract_strided_slice %55 {offsets = [0, 16], sizes = [16, 16], strides = [1, 1]} : vector<16x96xf32> to vector<16x16xf32>
    %74 = vector.extract_strided_slice %55 {offsets = [0, 48], sizes = [16, 16], strides = [1, 1]} : vector<16x96xf32> to vector<16x16xf32>
    %75 = vector.extract_strided_slice %55 {offsets = [0, 80], sizes = [16, 16], strides = [1, 1]} : vector<16x96xf32> to vector<16x16xf32>
    %cst_25 = arith.constant dense<0.000000e+00> : vector<16x16xf32>
    %76 = tpu.matmul %73, %74, %cst_25 {dimension_numbers = #tpu.dot_dimension_numbers<[1], [1], [0], [0], [0, 0, 1, 0], [], []>} : vector<16x16xf32>, vector<16x16xf32>, vector<16x16xf32> -> vector<16x16xf32>
    %cst_26 = arith.constant 2.500000e-01 : f32
    %77 = vector.broadcast %cst_26 : f32 to vector<16x16xf32>
    %78 = arith.mulf %76, %77 : vector<16x16xf32>
    %cst_27 = arith.constant dense<0xFF800000> : vector<16xf32>
    %79 = vector.multi_reduction <maximumf>, %78, %cst_27 [1] : vector<16x16xf32> to vector<16xf32>
    %80 = vector.shape_cast %79 : vector<16xf32> to vector<16x1xf32>
    %81 = vector.broadcast %80 : vector<16x1xf32> to vector<16x16xf32>
    %82 = arith.subf %78, %81 : vector<16x16xf32>
    %83 = math.exp %82 : vector<16x16xf32>
    %cst_28 = arith.constant dense<0.000000e+00> : vector<16xf32>
    %84 = vector.multi_reduction <add>, %83, %cst_28 [1] : vector<16x16xf32> to vector<16xf32>
    %85 = vector.shape_cast %84 : vector<16xf32> to vector<16x1xf32>
    %86 = tpu.reciprocal %85 {approx = true} : vector<16x1xf32> -> vector<16x1xf32>
    %87 = vector.broadcast %86 : vector<16x1xf32> to vector<16x16xf32>
    %88 = arith.mulf %83, %87 : vector<16x16xf32>
    %cst_29 = arith.constant dense<0.000000e+00> : vector<16x16xf32>
    %89 = tpu.matmul %88, %75, %cst_29 {dimension_numbers = #tpu.dot_dimension_numbers<[1], [0], [0], [1], [0, 0, 1, 1], [], []>} : vector<16x16xf32>, vector<16x16xf32>, vector<16x16xf32> -> vector<16x16xf32>
    %90 = tpu.concatenate %72, %89 in 1 : vector<16x16xf32>, vector<16x16xf32> -> vector<16x32xf32>
    %c112 = arith.constant 112 : index
    %c0_30 = arith.constant 0 : index
    %91 = vector.load %arg2[%c112, %c0_30] : memref<544x128xf32, #tpu.memory_space<vmem>>, vector<32x32xf32>
    %cst_31 = arith.constant dense<0.000000e+00> : vector<16x32xf32>
    %92 = tpu.matmul %90, %91, %cst_31 {dimension_numbers = #tpu.dot_dimension_numbers<[1], [0], [0], [1], [0, 0, 1, 1], [], []>} : vector<16x32xf32>, vector<32x32xf32>, vector<16x32xf32> -> vector<16x32xf32>
    %c7 = arith.constant 7 : index
    %c0_32 = arith.constant 0 : index
    %93 = vector.load %arg3[%c7, %c0_32] : memref<24x128xf32, #tpu.memory_space<vmem>>, vector<1x32xf32>
    %94 = vector.broadcast %93 : vector<1x32xf32> to vector<16x32xf32>
    %95 = arith.addf %92, %94 : vector<16x32xf32>
    %96 = arith.addf %50, %95 : vector<16x32xf32>
    %c8 = arith.constant 8 : index
    %c0_33 = arith.constant 0 : index
    %97 = vector.load %arg3[%c8, %c0_33] : memref<24x128xf32, #tpu.memory_space<vmem>>, vector<1x32xf32>
    %c9 = arith.constant 9 : index
    %c0_34 = arith.constant 0 : index
    %98 = vector.load %arg3[%c9, %c0_34] : memref<24x128xf32, #tpu.memory_space<vmem>>, vector<1x32xf32>
    %cst_35 = arith.constant dense<0.000000e+00> : vector<16xf32>
    %99 = vector.multi_reduction <add>, %96, %cst_35 [1] : vector<16x32xf32> to vector<16xf32>
    %100 = vector.shape_cast %99 : vector<16xf32> to vector<16x1xf32>
    %cst_36 = arith.constant 3.200000e+01 : f32
    %101 = vector.broadcast %cst_36 : f32 to vector<16x1xf32>
    %102 = arith.divf %100, %101 : vector<16x1xf32>
    %103 = vector.broadcast %102 : vector<16x1xf32> to vector<16x32xf32>
    %104 = arith.subf %96, %103 : vector<16x32xf32>
    %105 = arith.mulf %104, %104 : vector<16x32xf32>
    %cst_37 = arith.constant dense<0.000000e+00> : vector<16xf32>
    %106 = vector.multi_reduction <add>, %105, %cst_37 [1] : vector<16x32xf32> to vector<16xf32>
    %107 = vector.shape_cast %106 : vector<16xf32> to vector<16x1xf32>
    %cst_38 = arith.constant 3.200000e+01 : f32
    %108 = vector.broadcast %cst_38 : f32 to vector<16x1xf32>
    %109 = arith.divf %107, %108 : vector<16x1xf32>
    %110 = vector.broadcast %102 : vector<16x1xf32> to vector<16x32xf32>
    %111 = arith.subf %96, %110 : vector<16x32xf32>
    %cst_39 = arith.constant 9.99999974E-6 : f32
    %112 = vector.broadcast %cst_39 : f32 to vector<16x1xf32>
    %113 = arith.addf %109, %112 : vector<16x1xf32>
    %114 = math.rsqrt %113 : vector<16x1xf32>
    %115 = vector.broadcast %114 : vector<16x1xf32> to vector<16x32xf32>
    %116 = arith.mulf %111, %115 : vector<16x32xf32>
    %117 = vector.broadcast %97 : vector<1x32xf32> to vector<16x32xf32>
    %118 = arith.mulf %116, %117 : vector<16x32xf32>
    %119 = vector.broadcast %98 : vector<1x32xf32> to vector<16x32xf32>
    %120 = arith.addf %118, %119 : vector<16x32xf32>
    %c176 = arith.constant 176 : index
    %c0_40 = arith.constant 0 : index
    %121 = vector.load %arg2[%c176, %c0_40] : memref<544x128xf32, #tpu.memory_space<vmem>>, vector<32x128xf32>
    %cst_41 = arith.constant dense<0.000000e+00> : vector<16x128xf32>
    %122 = tpu.matmul %120, %121, %cst_41 {dimension_numbers = #tpu.dot_dimension_numbers<[1], [0], [0], [1], [0, 0, 1, 1], [], []>} : vector<16x32xf32>, vector<32x128xf32>, vector<16x128xf32> -> vector<16x128xf32>
    %c10 = arith.constant 10 : index
    %c0_42 = arith.constant 0 : index
    %123 = vector.load %arg3[%c10, %c0_42] : memref<24x128xf32, #tpu.memory_space<vmem>>, vector<1x128xf32>
    %124 = vector.broadcast %123 : vector<1x128xf32> to vector<16x128xf32>
    %125 = arith.addf %122, %124 : vector<16x128xf32>
    %cst_43 = arith.constant 0.000000e+00 : f32
    %126 = vector.broadcast %cst_43 : f32 to vector<16x128xf32>
    %127 = arith.maximumf %125, %126 : vector<16x128xf32>
    %c240 = arith.constant 240 : index
    %c0_44 = arith.constant 0 : index
    %128 = vector.load %arg2[%c240, %c0_44] : memref<544x128xf32, #tpu.memory_space<vmem>>, vector<128x32xf32>
    %cst_45 = arith.constant dense<0.000000e+00> : vector<16x32xf32>
    %129 = tpu.matmul %127, %128, %cst_45 {dimension_numbers = #tpu.dot_dimension_numbers<[1], [0], [0], [1], [0, 0, 1, 1], [], []>} : vector<16x128xf32>, vector<128x32xf32>, vector<16x32xf32> -> vector<16x32xf32>
    %c11 = arith.constant 11 : index
    %c0_46 = arith.constant 0 : index
    %130 = vector.load %arg3[%c11, %c0_46] : memref<24x128xf32, #tpu.memory_space<vmem>>, vector<1x32xf32>
    %131 = vector.broadcast %130 : vector<1x32xf32> to vector<16x32xf32>
    %132 = arith.addf %129, %131 : vector<16x32xf32>
    %133 = arith.addf %120, %132 : vector<16x32xf32>
    %c12 = arith.constant 12 : index
    %c0_47 = arith.constant 0 : index
    %134 = vector.load %arg3[%c12, %c0_47] : memref<24x128xf32, #tpu.memory_space<vmem>>, vector<1x32xf32>
    %c13 = arith.constant 13 : index
    %c0_48 = arith.constant 0 : index
    %135 = vector.load %arg3[%c13, %c0_48] : memref<24x128xf32, #tpu.memory_space<vmem>>, vector<1x32xf32>
    %cst_49 = arith.constant dense<0.000000e+00> : vector<16xf32>
    %136 = vector.multi_reduction <add>, %133, %cst_49 [1] : vector<16x32xf32> to vector<16xf32>
    %137 = vector.shape_cast %136 : vector<16xf32> to vector<16x1xf32>
    %cst_50 = arith.constant 3.200000e+01 : f32
    %138 = vector.broadcast %cst_50 : f32 to vector<16x1xf32>
    %139 = arith.divf %137, %138 : vector<16x1xf32>
    %140 = vector.broadcast %139 : vector<16x1xf32> to vector<16x32xf32>
    %141 = arith.subf %133, %140 : vector<16x32xf32>
    %142 = arith.mulf %141, %141 : vector<16x32xf32>
    %cst_51 = arith.constant dense<0.000000e+00> : vector<16xf32>
    %143 = vector.multi_reduction <add>, %142, %cst_51 [1] : vector<16x32xf32> to vector<16xf32>
    %144 = vector.shape_cast %143 : vector<16xf32> to vector<16x1xf32>
    %cst_52 = arith.constant 3.200000e+01 : f32
    %145 = vector.broadcast %cst_52 : f32 to vector<16x1xf32>
    %146 = arith.divf %144, %145 : vector<16x1xf32>
    %147 = vector.broadcast %139 : vector<16x1xf32> to vector<16x32xf32>
    %148 = arith.subf %133, %147 : vector<16x32xf32>
    %cst_53 = arith.constant 9.99999974E-6 : f32
    %149 = vector.broadcast %cst_53 : f32 to vector<16x1xf32>
    %150 = arith.addf %146, %149 : vector<16x1xf32>
    %151 = math.rsqrt %150 : vector<16x1xf32>
    %152 = vector.broadcast %151 : vector<16x1xf32> to vector<16x32xf32>
    %153 = arith.mulf %148, %152 : vector<16x32xf32>
    %154 = vector.broadcast %134 : vector<1x32xf32> to vector<16x32xf32>
    %155 = arith.mulf %153, %154 : vector<16x32xf32>
    %156 = vector.broadcast %135 : vector<1x32xf32> to vector<16x32xf32>
    %157 = arith.addf %155, %156 : vector<16x32xf32>
    %158 = vector.extract_strided_slice %157 {offsets = [0, 0], sizes = [1, 32], strides = [1, 1]} : vector<16x32xf32> to vector<1x32xf32>
    %c80 = arith.constant 80 : index
    %c0_54 = arith.constant 0 : index
    %159 = vector.load %arg2[%c80, %c0_54] : memref<544x128xf32, #tpu.memory_space<vmem>>, vector<32x96xf32>
    %c14 = arith.constant 14 : index
    %c0_55 = arith.constant 0 : index
    %160 = vector.load %arg3[%c14, %c0_55] : memref<24x128xf32, #tpu.memory_space<vmem>>, vector<1x96xf32>
    %161 = vector.extract_strided_slice %159 {offsets = [0, 0], sizes = [32, 32], strides = [1, 1]} : vector<32x96xf32> to vector<32x32xf32>
    %cst_56 = arith.constant dense<0.000000e+00> : vector<1x32xf32>
    %162 = tpu.matmul %158, %161, %cst_56 {dimension_numbers = #tpu.dot_dimension_numbers<[1], [0], [0], [1], [0, 0, 1, 1], [], []>} : vector<1x32xf32>, vector<32x32xf32>, vector<1x32xf32> -> vector<1x32xf32>
    %163 = vector.extract_strided_slice %160 {offsets = [0, 0], sizes = [1, 32], strides = [1, 1]} : vector<1x96xf32> to vector<1x32xf32>
    %164 = arith.addf %162, %163 : vector<1x32xf32>
    %165 = vector.extract_strided_slice %159 {offsets = [0, 32], sizes = [32, 64], strides = [1, 1]} : vector<32x96xf32> to vector<32x64xf32>
    %cst_57 = arith.constant dense<0.000000e+00> : vector<16x64xf32>
    %166 = tpu.matmul %157, %165, %cst_57 {dimension_numbers = #tpu.dot_dimension_numbers<[1], [0], [0], [1], [0, 0, 1, 1], [], []>} : vector<16x32xf32>, vector<32x64xf32>, vector<16x64xf32> -> vector<16x64xf32>
    %167 = vector.extract_strided_slice %160 {offsets = [0, 32], sizes = [1, 64], strides = [1, 1]} : vector<1x96xf32> to vector<1x64xf32>
    %168 = vector.broadcast %167 : vector<1x64xf32> to vector<16x64xf32>
    %169 = arith.addf %166, %168 : vector<16x64xf32>
    %170 = vector.extract_strided_slice %164 {offsets = [0, 0], sizes = [1, 16], strides = [1, 1]} : vector<1x32xf32> to vector<1x16xf32>
    %171 = vector.extract_strided_slice %169 {offsets = [0, 0], sizes = [16, 16], strides = [1, 1]} : vector<16x64xf32> to vector<16x16xf32>
    %172 = vector.extract_strided_slice %169 {offsets = [0, 32], sizes = [16, 16], strides = [1, 1]} : vector<16x64xf32> to vector<16x16xf32>
    %cst_58 = arith.constant dense<0.000000e+00> : vector<1x16xf32>
    %173 = tpu.matmul %170, %171, %cst_58 {dimension_numbers = #tpu.dot_dimension_numbers<[1], [1], [0], [0], [0, 0, 1, 0], [], []>} : vector<1x16xf32>, vector<16x16xf32>, vector<1x16xf32> -> vector<1x16xf32>
    %cst_59 = arith.constant 2.500000e-01 : f32
    %174 = vector.broadcast %cst_59 : f32 to vector<1x16xf32>
    %175 = arith.mulf %173, %174 : vector<1x16xf32>
    %cst_60 = arith.constant dense<0xFF800000> : vector<1xf32>
    %176 = vector.multi_reduction <maximumf>, %175, %cst_60 [1] : vector<1x16xf32> to vector<1xf32>
    %177 = vector.shape_cast %176 : vector<1xf32> to vector<1x1xf32>
    %178 = vector.broadcast %177 : vector<1x1xf32> to vector<1x16xf32>
    %179 = arith.subf %175, %178 : vector<1x16xf32>
    %180 = math.exp %179 : vector<1x16xf32>
    %cst_61 = arith.constant dense<0.000000e+00> : vector<1xf32>
    %181 = vector.multi_reduction <add>, %180, %cst_61 [1] : vector<1x16xf32> to vector<1xf32>
    %182 = vector.shape_cast %181 : vector<1xf32> to vector<1x1xf32>
    %183 = tpu.reciprocal %182 {approx = true} : vector<1x1xf32> -> vector<1x1xf32>
    %184 = vector.broadcast %183 : vector<1x1xf32> to vector<1x16xf32>
    %185 = arith.mulf %180, %184 : vector<1x16xf32>
    %cst_62 = arith.constant dense<0.000000e+00> : vector<1x16xf32>
    %186 = tpu.matmul %185, %172, %cst_62 {dimension_numbers = #tpu.dot_dimension_numbers<[1], [0], [0], [1], [0, 0, 1, 1], [], []>} : vector<1x16xf32>, vector<16x16xf32>, vector<1x16xf32> -> vector<1x16xf32>
    %187 = vector.extract_strided_slice %164 {offsets = [0, 16], sizes = [1, 16], strides = [1, 1]} : vector<1x32xf32> to vector<1x16xf32>
    %188 = vector.extract_strided_slice %169 {offsets = [0, 16], sizes = [16, 16], strides = [1, 1]} : vector<16x64xf32> to vector<16x16xf32>
    %189 = vector.extract_strided_slice %169 {offsets = [0, 48], sizes = [16, 16], strides = [1, 1]} : vector<16x64xf32> to vector<16x16xf32>
    %cst_63 = arith.constant dense<0.000000e+00> : vector<1x16xf32>
    %190 = tpu.matmul %187, %188, %cst_63 {dimension_numbers = #tpu.dot_dimension_numbers<[1], [1], [0], [0], [0, 0, 1, 0], [], []>} : vector<1x16xf32>, vector<16x16xf32>, vector<1x16xf32> -> vector<1x16xf32>
    %cst_64 = arith.constant 2.500000e-01 : f32
    %191 = vector.broadcast %cst_64 : f32 to vector<1x16xf32>
    %192 = arith.mulf %190, %191 : vector<1x16xf32>
    %cst_65 = arith.constant dense<0xFF800000> : vector<1xf32>
    %193 = vector.multi_reduction <maximumf>, %192, %cst_65 [1] : vector<1x16xf32> to vector<1xf32>
    %194 = vector.shape_cast %193 : vector<1xf32> to vector<1x1xf32>
    %195 = vector.broadcast %194 : vector<1x1xf32> to vector<1x16xf32>
    %196 = arith.subf %192, %195 : vector<1x16xf32>
    %197 = math.exp %196 : vector<1x16xf32>
    %cst_66 = arith.constant dense<0.000000e+00> : vector<1xf32>
    %198 = vector.multi_reduction <add>, %197, %cst_66 [1] : vector<1x16xf32> to vector<1xf32>
    %199 = vector.shape_cast %198 : vector<1xf32> to vector<1x1xf32>
    %200 = tpu.reciprocal %199 {approx = true} : vector<1x1xf32> -> vector<1x1xf32>
    %201 = vector.broadcast %200 : vector<1x1xf32> to vector<1x16xf32>
    %202 = arith.mulf %197, %201 : vector<1x16xf32>
    %cst_67 = arith.constant dense<0.000000e+00> : vector<1x16xf32>
    %203 = tpu.matmul %202, %189, %cst_67 {dimension_numbers = #tpu.dot_dimension_numbers<[1], [0], [0], [1], [0, 0, 1, 1], [], []>} : vector<1x16xf32>, vector<16x16xf32>, vector<1x16xf32> -> vector<1x16xf32>
    %204 = tpu.concatenate %186, %203 in 1 : vector<1x16xf32>, vector<1x16xf32> -> vector<1x32xf32>
    %c144 = arith.constant 144 : index
    %c0_68 = arith.constant 0 : index
    %205 = vector.load %arg2[%c144, %c0_68] : memref<544x128xf32, #tpu.memory_space<vmem>>, vector<32x32xf32>
    %cst_69 = arith.constant dense<0.000000e+00> : vector<1x32xf32>
    %206 = tpu.matmul %204, %205, %cst_69 {dimension_numbers = #tpu.dot_dimension_numbers<[1], [0], [0], [1], [0, 0, 1, 1], [], []>} : vector<1x32xf32>, vector<32x32xf32>, vector<1x32xf32> -> vector<1x32xf32>
    %c15 = arith.constant 15 : index
    %c0_70 = arith.constant 0 : index
    %207 = vector.load %arg3[%c15, %c0_70] : memref<24x128xf32, #tpu.memory_space<vmem>>, vector<1x32xf32>
    %208 = arith.addf %206, %207 : vector<1x32xf32>
    %209 = arith.addf %158, %208 : vector<1x32xf32>
    %c16_71 = arith.constant 16 : index
    %c0_72 = arith.constant 0 : index
    %210 = vector.load %arg3[%c16_71, %c0_72] : memref<24x128xf32, #tpu.memory_space<vmem>>, vector<1x32xf32>
    %c17 = arith.constant 17 : index
    %c0_73 = arith.constant 0 : index
    %211 = vector.load %arg3[%c17, %c0_73] : memref<24x128xf32, #tpu.memory_space<vmem>>, vector<1x32xf32>
    %cst_74 = arith.constant dense<0.000000e+00> : vector<1xf32>
    %212 = vector.multi_reduction <add>, %209, %cst_74 [1] : vector<1x32xf32> to vector<1xf32>
    %213 = vector.shape_cast %212 : vector<1xf32> to vector<1x1xf32>
    %cst_75 = arith.constant 3.200000e+01 : f32
    %214 = vector.broadcast %cst_75 : f32 to vector<1x1xf32>
    %215 = arith.divf %213, %214 : vector<1x1xf32>
    %216 = vector.broadcast %215 : vector<1x1xf32> to vector<1x32xf32>
    %217 = arith.subf %209, %216 : vector<1x32xf32>
    %218 = arith.mulf %217, %217 : vector<1x32xf32>
    %cst_76 = arith.constant dense<0.000000e+00> : vector<1xf32>
    %219 = vector.multi_reduction <add>, %218, %cst_76 [1] : vector<1x32xf32> to vector<1xf32>
    %220 = vector.shape_cast %219 : vector<1xf32> to vector<1x1xf32>
    %cst_77 = arith.constant 3.200000e+01 : f32
    %221 = vector.broadcast %cst_77 : f32 to vector<1x1xf32>
    %222 = arith.divf %220, %221 : vector<1x1xf32>
    %223 = vector.broadcast %215 : vector<1x1xf32> to vector<1x32xf32>
    %224 = arith.subf %209, %223 : vector<1x32xf32>
    %cst_78 = arith.constant 9.99999974E-6 : f32
    %225 = vector.broadcast %cst_78 : f32 to vector<1x1xf32>
    %226 = arith.addf %222, %225 : vector<1x1xf32>
    %227 = math.rsqrt %226 : vector<1x1xf32>
    %228 = vector.broadcast %227 : vector<1x1xf32> to vector<1x32xf32>
    %229 = arith.mulf %224, %228 : vector<1x32xf32>
    %230 = arith.mulf %229, %210 : vector<1x32xf32>
    %231 = arith.addf %230, %211 : vector<1x32xf32>
    %c208 = arith.constant 208 : index
    %c0_79 = arith.constant 0 : index
    %232 = vector.load %arg2[%c208, %c0_79] : memref<544x128xf32, #tpu.memory_space<vmem>>, vector<32x128xf32>
    %cst_80 = arith.constant dense<0.000000e+00> : vector<1x128xf32>
    %233 = tpu.matmul %231, %232, %cst_80 {dimension_numbers = #tpu.dot_dimension_numbers<[1], [0], [0], [1], [0, 0, 1, 1], [], []>} : vector<1x32xf32>, vector<32x128xf32>, vector<1x128xf32> -> vector<1x128xf32>
    %c18 = arith.constant 18 : index
    %c0_81 = arith.constant 0 : index
    %234 = vector.load %arg3[%c18, %c0_81] : memref<24x128xf32, #tpu.memory_space<vmem>>, vector<1x128xf32>
    %235 = arith.addf %233, %234 : vector<1x128xf32>
    %cst_82 = arith.constant 0.000000e+00 : f32
    %236 = vector.broadcast %cst_82 : f32 to vector<1x128xf32>
    %237 = arith.maximumf %235, %236 : vector<1x128xf32>
    %c368 = arith.constant 368 : index
    %c0_83 = arith.constant 0 : index
    %238 = vector.load %arg2[%c368, %c0_83] : memref<544x128xf32, #tpu.memory_space<vmem>>, vector<128x32xf32>
    %cst_84 = arith.constant dense<0.000000e+00> : vector<1x32xf32>
    %239 = tpu.matmul %237, %238, %cst_84 {dimension_numbers = #tpu.dot_dimension_numbers<[1], [0], [0], [1], [0, 0, 1, 1], [], []>} : vector<1x128xf32>, vector<128x32xf32>, vector<1x32xf32> -> vector<1x32xf32>
    %c19 = arith.constant 19 : index
    %c0_85 = arith.constant 0 : index
    %240 = vector.load %arg3[%c19, %c0_85] : memref<24x128xf32, #tpu.memory_space<vmem>>, vector<1x32xf32>
    %241 = arith.addf %239, %240 : vector<1x32xf32>
    %242 = arith.addf %231, %241 : vector<1x32xf32>
    %c20 = arith.constant 20 : index
    %c0_86 = arith.constant 0 : index
    %243 = vector.load %arg3[%c20, %c0_86] : memref<24x128xf32, #tpu.memory_space<vmem>>, vector<1x32xf32>
    %c21 = arith.constant 21 : index
    %c0_87 = arith.constant 0 : index
    %244 = vector.load %arg3[%c21, %c0_87] : memref<24x128xf32, #tpu.memory_space<vmem>>, vector<1x32xf32>
    %cst_88 = arith.constant dense<0.000000e+00> : vector<1xf32>
    %245 = vector.multi_reduction <add>, %242, %cst_88 [1] : vector<1x32xf32> to vector<1xf32>
    %246 = vector.shape_cast %245 : vector<1xf32> to vector<1x1xf32>
    %cst_89 = arith.constant 3.200000e+01 : f32
    %247 = vector.broadcast %cst_89 : f32 to vector<1x1xf32>
    %248 = arith.divf %246, %247 : vector<1x1xf32>
    %249 = vector.broadcast %248 : vector<1x1xf32> to vector<1x32xf32>
    %250 = arith.subf %242, %249 : vector<1x32xf32>
    %251 = arith.mulf %250, %250 : vector<1x32xf32>
    %cst_90 = arith.constant dense<0.000000e+00> : vector<1xf32>
    %252 = vector.multi_reduction <add>, %251, %cst_90 [1] : vector<1x32xf32> to vector<1xf32>
    %253 = vector.shape_cast %252 : vector<1xf32> to vector<1x1xf32>
    %cst_91 = arith.constant 3.200000e+01 : f32
    %254 = vector.broadcast %cst_91 : f32 to vector<1x1xf32>
    %255 = arith.divf %253, %254 : vector<1x1xf32>
    %256 = vector.broadcast %248 : vector<1x1xf32> to vector<1x32xf32>
    %257 = arith.subf %242, %256 : vector<1x32xf32>
    %cst_92 = arith.constant 9.99999974E-6 : f32
    %258 = vector.broadcast %cst_92 : f32 to vector<1x1xf32>
    %259 = arith.addf %255, %258 : vector<1x1xf32>
    %260 = math.rsqrt %259 : vector<1x1xf32>
    %261 = vector.broadcast %260 : vector<1x1xf32> to vector<1x32xf32>
    %262 = arith.mulf %257, %261 : vector<1x32xf32>
    %263 = arith.mulf %262, %243 : vector<1x32xf32>
    %264 = arith.addf %263, %244 : vector<1x32xf32>
    %c2 = arith.constant 2 : index
    %c0_93 = arith.constant 0 : index
    %265 = vector.load %arg3[%c2, %c0_93] : memref<24x128xf32, #tpu.memory_space<vmem>>, vector<1x32xf32>
    %c3 = arith.constant 3 : index
    %c0_94 = arith.constant 0 : index
    %266 = vector.load %arg3[%c3, %c0_94] : memref<24x128xf32, #tpu.memory_space<vmem>>, vector<1x32xf32>
    %cst_95 = arith.constant dense<0.000000e+00> : vector<1xf32>
    %267 = vector.multi_reduction <add>, %264, %cst_95 [1] : vector<1x32xf32> to vector<1xf32>
    %268 = vector.shape_cast %267 : vector<1xf32> to vector<1x1xf32>
    %cst_96 = arith.constant 3.200000e+01 : f32
    %269 = vector.broadcast %cst_96 : f32 to vector<1x1xf32>
    %270 = arith.divf %268, %269 : vector<1x1xf32>
    %271 = vector.broadcast %270 : vector<1x1xf32> to vector<1x32xf32>
    %272 = arith.subf %264, %271 : vector<1x32xf32>
    %273 = arith.mulf %272, %272 : vector<1x32xf32>
    %cst_97 = arith.constant dense<0.000000e+00> : vector<1xf32>
    %274 = vector.multi_reduction <add>, %273, %cst_97 [1] : vector<1x32xf32> to vector<1xf32>
    %275 = vector.shape_cast %274 : vector<1xf32> to vector<1x1xf32>
    %cst_98 = arith.constant 3.200000e+01 : f32
    %276 = vector.broadcast %cst_98 : f32 to vector<1x1xf32>
    %277 = arith.divf %275, %276 : vector<1x1xf32>
    %278 = vector.broadcast %270 : vector<1x1xf32> to vector<1x32xf32>
    %279 = arith.subf %264, %278 : vector<1x32xf32>
    %cst_99 = arith.constant 9.99999974E-6 : f32
    %280 = vector.broadcast %cst_99 : f32 to vector<1x1xf32>
    %281 = arith.addf %277, %280 : vector<1x1xf32>
    %282 = math.rsqrt %281 : vector<1x1xf32>
    %283 = vector.broadcast %282 : vector<1x1xf32> to vector<1x32xf32>
    %284 = arith.mulf %279, %283 : vector<1x32xf32>
    %285 = arith.mulf %284, %265 : vector<1x32xf32>
    %286 = arith.addf %285, %266 : vector<1x32xf32>
    %c496 = arith.constant 496 : index
    %c0_100 = arith.constant 0 : index
    %287 = vector.load %arg2[%c496, %c0_100] : memref<544x128xf32, #tpu.memory_space<vmem>>, vector<32x16xf32>
    %cst_101 = arith.constant dense<0.000000e+00> : vector<1x16xf32>
    %288 = tpu.matmul %286, %287, %cst_101 {dimension_numbers = #tpu.dot_dimension_numbers<[1], [0], [0], [1], [0, 0, 1, 1], [], []>} : vector<1x32xf32>, vector<32x16xf32>, vector<1x16xf32> -> vector<1x16xf32>
    %c4 = arith.constant 4 : index
    %c0_102 = arith.constant 0 : index
    %289 = vector.load %arg3[%c4, %c0_102] : memref<24x128xf32, #tpu.memory_space<vmem>>, vector<1x16xf32>
    %290 = arith.addf %288, %289 : vector<1x16xf32>
    %cst_103 = arith.constant 5.000000e-01 : f32
    %291 = vector.broadcast %cst_103 : f32 to vector<1x16xf32>
    %292 = arith.mulf %291, %290 : vector<1x16xf32>
    %cst_104 = arith.constant 4.471500e-02 : f32
    %293 = vector.broadcast %cst_104 : f32 to vector<1x16xf32>
    %294 = arith.mulf %293, %290 : vector<1x16xf32>
    %295 = arith.mulf %294, %290 : vector<1x16xf32>
    %296 = arith.mulf %295, %290 : vector<1x16xf32>
    %297 = arith.addf %290, %296 : vector<1x16xf32>
    %cst_105 = arith.constant 0.797884583 : f32
    %298 = vector.broadcast %cst_105 : f32 to vector<1x16xf32>
    %299 = arith.mulf %298, %297 : vector<1x16xf32>
    %300 = math.tanh %299 : vector<1x16xf32>
    %cst_106 = arith.constant 1.000000e+00 : f32
    %301 = vector.broadcast %cst_106 : f32 to vector<1x16xf32>
    %302 = arith.addf %301, %300 : vector<1x16xf32>
    %303 = arith.mulf %292, %302 : vector<1x16xf32>
    %c528 = arith.constant 528 : index
    %c0_107 = arith.constant 0 : index
    %304 = vector.load %arg2[%c528, %c0_107] : memref<544x128xf32, #tpu.memory_space<vmem>>, vector<16x1xf32>
    %cst_108 = arith.constant dense<0.000000e+00> : vector<1x1xf32>
    %305 = tpu.matmul %303, %304, %cst_108 {dimension_numbers = #tpu.dot_dimension_numbers<[1], [0], [0], [1], [0, 0, 1, 1], [], []>} : vector<1x16xf32>, vector<16x1xf32>, vector<1x1xf32> -> vector<1x1xf32>
    %c5 = arith.constant 5 : index
    %c0_109 = arith.constant 0 : index
    %306 = vector.load %arg3[%c5, %c0_109] : memref<24x128xf32, #tpu.memory_space<vmem>>, vector<1x1xf32>
    %307 = arith.addf %305, %306 : vector<1x1xf32>
    %308 = vector.shape_cast %307 : vector<1x1xf32> to vector<1x1x1xf32>
    %c0_110 = arith.constant 0 : index
    %c0_111 = arith.constant 0 : index
    %c0_112 = arith.constant 0 : index
    %309 = vector.load %arg4[%c0_110, %c0_111, %c0_112] : memref<1x1x1xf32, #tpu.memory_space<vmem>>, vector<1x1x1xf32>
    tpu.vector_store %arg4[%c0_110, %c0_111, %c0_112], %308 {strides = array<i32>} : memref<1x1x1xf32, #tpu.memory_space<vmem>>, vector<1x1x1xf32>,
    return
  }
  func.func @transform_0(%arg0: i32) -> (i32, i32, i32) {
    %c0_i32 = arith.constant 0 : i32
    %c0_i32_0 = arith.constant 0 : i32
    %c0_i32_1 = arith.constant 0 : i32
    return %arg0, %c0_i32, %c0_i32_0 : i32, i32, i32
  }
  func.func @transform_1(%arg0: i32) -> (i32, i32) {
    %c0_i32 = arith.constant 0 : i32
    %c0_i32_0 = arith.constant 0 : i32
    %c0_i32_1 = arith.constant 0 : i32
    return %c0_i32, %c0_i32_0 : i32, i32
  }
  func.func @transform_2(%arg0: i32) -> (i32, i32) {
    %c0_i32 = arith.constant 0 : i32
    %c0_i32_0 = arith.constant 0 : i32
    %c0_i32_1 = arith.constant 0 : i32
    return %c0_i32, %c0_i32_0 : i32, i32
  }
  func.func @transform_3(%arg0: i32) -> (i32, i32, i32) {
    %c0_i32 = arith.constant 0 : i32
    %c0_i32_0 = arith.constant 0 : i32
    %c0_i32_1 = arith.constant 0 : i32
    return %arg0, %c0_i32, %c0_i32_0 : i32, i32, i32
  }
}

</mosaic_0001>

<bundles_post_ra>
// kernel: model_forward.1
= control target key start
LH: loop header
LB: loop body
LE: loop exit
PB: predicated region body
PF: predicated region fallthrough
CT: control target
= control target key end

     0   :  { %8 = vsyncpa [#allocation3], 0  ;;  %s2915_s12 = smov 0   ;;  %s3201_s0 = inlined_call_operand.vmem [shape: f32[2,16,1], index: 0, kind: input, shape index: {}]   ;;  %s3202_s1 = inlined_call_operand.hbm [shape: f32[544,128], index: 1, kind: input, shape index: {}]   ;;  %s3203_s2 = inlined_call_operand.vmem [shape: f32[24,128], index: 2, kind: input, shape index: {}]   ;;  %s3204_s3 = inlined_call_operand.vmem [shape: f32[2,1,1], index: 3, kind: output, shape index: {}]  }
   0x1 LB: > { %s2921_s13 = sadd.s32 4294967295, %s2880_s12   ;;  %p2184_p0 = scmp.ge.s32.totalorder %s2880_s12, 1  ;;  %s2880_s12 = sphi %s2915_s12, %s14_s12  }
   0x2   : > { %p113_p1 = scmp.lt.s32.totalorder %s2880_s12, 3  ;;  %s2882_s14 = smov [#allocation2]  }
   0x3   : > { %s125_s15 = sshll.u32 %s2882_s14, 4  ;;  %p3205_p3 = scmp.eq.s32.totalorder %s2921_s13, 0  ;;  %s126_s15 = int_to_ptr.vmem [resolvable:$true] %s125_s15 }
   0x4   : > { %p2925_p2 = pnand %p2184_p0, %p113_p1  ;;  %s2842_s20 = scalar_lea.hbm %s3202_s1, 8704 }
   0x5   : > { %p2843_p6 = scmp.ne.s32.totalorder %s3202_s1, %s2842_s20  ;;  %p2849_p10 = scmp.lt.u32.totalorder %s2842_s20, %s3202_s1 }
   0x6   : > { %s3207_s16 = scalar_select %p2925_p2, 1, 0 }
   0x7   : > { %p2721_p4 = pneg %p2925_p2 }
   0x9   : > { %p2934_p5 = pnand %p3205_p3, %p2721_p4 }
   0xb   : > { %p2844_p7 = pneg %p2934_p5 }
   0xd   : > { %p2845_p8 = pnand %p2844_p7, %p2843_p6 }
   0xf   : > { %p2846_p9 = pneg %p2845_p8 }
  0x11   : > { %p2851_p11 = pnand %p2849_p10, %p2846_p9 }
  0x13   : > { %2854 = shalt.err (!%p2851_p11)
}
  0x14   : > { %s2855_s25 = scalar_lea.vmem %s126_s15, 8704  ;;  %p2863_p1 = scmp.lt.s32.totalorder %s126_s15, %s126_s15 }
  0x15   : > { %p2856_p12 = scmp.ne.s32.totalorder %s126_s15, %s2855_s25  ;;  %p2864_p4 = scmp.lt.s32.totalorder %s2855_s25, %s2855_s25 }
  0x17   : > { %p2858_p13 = pnand %p2856_p12, %p2844_p7  ;;  %p2865_p3 = por %p2864_p4, %p2863_p1 }
  0x19   : > { %p2859_p0 = pneg %p2858_p13 }
  0x1b   : > { %p2866_p2 = pnand %p2865_p3, %p2859_p0 }
  0x1d   : > { %2869 = shalt.err (!%p2866_p2)
}
  0x1e   : > { %s2883_s26 = smov 128   ;;  %s2884_s27 = smov 8  }
  0x1f   : > { %2724 = dma.hbm_to_vmem [thread:$0]  (!%p2934_p5), %s3202_s1, 8704, %s126_s15, [#allocation3], %s2883_s26, %s2883_s26, %s2884_s27  }
  0x20   : > { %p3209_p6 = scmp.ne.s32.totalorder %s3207_s16, 0 }
  0x21   : > { %p3210_p8 = scmp.eq.s32.totalorder (!%p3209_p6), %s2921_s13, 0 }
  0x22   : > { %152 = sbr.rel (%p3209_p6) target bundleno = 6693 (0x1a25), region = 32 }
  0x29   : > { %2875 = dma.done.wait (%p3210_p8), [#allocation3], 8704   ;;  %p3211_p7 = pmov %p3210_p8 }
  0x2a   : > { %p174_p2 = scmp.lt.s32.totalorder %s2921_s13, 1  ;;  %v2885_v0 = vmov 0   ;;  %v184_v3 = vld [vmem:[#allocation2] sm:$0xff]  ;;  %v198_v4 = vld [vmem:[#allocation2 + $0x10] sm:$0xff]  ;;  %v185_v7 = vld [vmem:[#allocation2 + $0x8] sm:$0xff]  ;;  %vm222_vm0 = vcmask 261120  }
  0x2b   : > { %2877 = vsyncadd (%p3211_p7), [#allocation3], 4294958592  ;;  %2748 = vset.pattern.permute.xlu0 %v2885_v0  ;;  %v199_v9 = vld [vmem:[#allocation2 + $0x18] sm:$0xff]  ;;  %v266_v43 = vld [vmem:[#allocation2 + $0x30] sm:$0xff]  ;;  %vm362_vm1 = vcmask 130048   ;;  %s2886_s15 = smov 96  }
  0x2c   : > { %s3215_s13 = smov (!%p174_p2, %s2921_s13), 1  ;;  %v267_v44 = vld [vmem:[#allocation2 + $0x38] sm:$0xff]  ;;  %v268_v45 = vld [vmem:[#allocation2 + $0x40] sm:$0xff]  ;;  %v269_v47 = vld [vmem:[#allocation2 + $0x48] sm:$0xff]  ;;  %s2887_s16 = smov 80   ;;  %vm2893_vm3 = vmmov 0  }
  0x2d   : > { %s2236_s30 = sshll.u32 %s3215_s13, 4  ;;  %v2568_v46 = vpack.c.bf16 %v267_v44, %v266_v43  ;;  %v2572_v48 = vpack.c.bf16 %v269_v47, %v268_v45  ;;  %v2191_v56 = vld [vmem:[%s3203_s2] ss:$0 sm:$0xff]  ;;  %v2192_v58 = vld [vmem:[%s3203_s2 + $0x1] ss:$0 sm:$0xff]  ;;  %s2888_s17 = smov 112   ;;  %vm3000_vm2 = vmpackc.low %vm362_vm1, %vm362_vm1 }
  0x2e   : > { %s178_s6 = scalar_lea.vmem %s3201_s0, %s2236_s30  ;;  %v262_v61 = vld [vmem:[#allocation2 + $0x20] sm:$0xff]  ;;  %s2889_s18 = smov 48   ;;  %vm1391_vm4 = vcmask 122880   ;;  %vm1741_vm5 = vcmask 253952   ;;  %vm2121_vm6 = vcmask 0  }
  0x2f   : > { %v182_v1 = vld [vmem:[%s178_s6] sm:$0xff]  ;;  %v183_v2 = vld [vmem:[%s178_s6 + $0x8] sm:$0xff]  ;;  %2569 = vmatprep.subr.bf16.mxu1 %v2568_v46  ;;  %s2890_s19 = smov 64   ;;  %s2891_s20 = smov 16  }
  0x30   : > { %188 = vperm.xlu0 %2748, %v182_v1   ;;  %2571 = vmatpush3.bf16.msra.mxu1 %v2568_v46  ;;  %s181_s9 = scalar_lea.vmem %s3204_s3, %s3215_s13 }
  0x31   : > { %2573 = vmatprep.subr.bf16.mxu1 %v2572_v48 }
  0x34   : > { %193 = vperm.xlu0 %2748, %v183_v2   ;;  %2575 = vmatpush3.bf16.msra.mxu1 %v2572_v48  ;;  %v263_v2 = vld [vmem:[#allocation2 + $0x28] sm:$0xff] }
  0xaf   : > { %v189_v5 = vpop.permute.xlu0 %188 }
  0xb0   : > { %v196_v6 = vmul.f32 %v189_v5, %v184_v3  ;;  %v2193_v5 = vld [vmem:[%s3203_s2 + $0x6] ss:$0 sm:$0xff] }
  0xb2   : > { %v200_v8 = vadd.f32 %v198_v4, %v196_v6 }
  0xb3   : > { %v194_v10 = vpop.permute.xlu0 %193 }
  0xb4   : > { %v197_v11 = vmul.f32 %v194_v10, %v185_v7  ;;  %v204_v12 = vmul.f32 0.044715, %v200_v8  ;;  %v202_v24 = vmul.f32 0.5, %v200_v8 }
  0xb6   : > { %v201_v13 = vadd.f32 %v199_v9, %v197_v11  ;;  %v206_v14 = vmul.f32 %v204_v12, %v200_v8 }
  0xb8   : > { %v208_v15 = vmul.f32 %v206_v14, %v200_v8  ;;  %v205_v16 = vmul.f32 0.044715, %v201_v13  ;;  %v203_v29 = vmul.f32 0.5, %v201_v13 }
  0xba   : > { %v210_v17 = vadd.f32 %v208_v15, %v200_v8  ;;  %v207_v18 = vmul.f32 %v205_v16, %v201_v13 }
  0xbc   : > { %v212_v19 = vmul.f32 0.7978846, %v210_v17  ;;  %v209_v20 = vmul.f32 %v207_v18, %v201_v13 }
  0xbe   : > { %2794 = vtanh.f32 %v212_v19  ;;  %v211_v21 = vadd.f32 %v209_v20, %v201_v13 }
  0xc0   : > { %v213_v22 = vmul.f32 0.7978846, %v211_v21 }
  0xc2   : > { %2796 = vtanh.f32 %v213_v22 }
  0xc8   : > { %v2795_v23 = vpop.eup %2794 }
  0xc9   : > { %v216_v25 = vadd.f32 1.0, %v2795_v23 }
  0xcb   : > { %v218_v26 = vmul.f32 %v216_v25, %v202_v24 }
  0xcc   : > { %v2797_v27 = vpop.eup %2796 }
  0xcd   : > { %v223_v28 = vsel %vm222_vm0, %v218_v26, 0.0  ;;  %v217_v30 = vadd.f32 1.0, %v2797_v27 }
  0xce   : > { %224 = vadd.xlane.f32.xlu1 %v223_v28 }
  0xcf   : > { %v219_v31 = vmul.f32 %v217_v30, %v203_v29 }
  0xd1   : > { %v226_v32 = vsel %vm222_vm0, %v219_v31, 0.0 }
  0xd2   : > { %227 = vadd.xlane.f32.xlu1 %v226_v32 }
 0x15b   : > { %v225_v33 = vpop.xlane.xlu1 %224 }
 0x15c   : > { %v230_v34 = vmul.f32 0.03125, %v225_v33 }
 0x15e   : > { %v232_v35 = vsub.f32 %v218_v26, %v230_v34 }
 0x15f   : > { %v228_v36 = vpop.xlane.xlu1 %227 }
 0x160   : > { %v231_v37 = vmul.f32 0.03125, %v228_v36  ;;  %v234_v38 = vmul.f32 %v232_v35, %v232_v35 }
 0x162   : > { %v233_v39 = vsub.f32 %v219_v31, %v231_v37  ;;  %v236_v40 = vsel %vm222_vm0, %v234_v38, 0.0 }
 0x163   : > { %237 = vadd.xlane.f32.xlu0 %v236_v40 }
 0x164   : > { %v235_v41 = vmul.f32 %v233_v39, %v233_v39 }
 0x166   : > { %v239_v42 = vsel %vm222_vm0, %v235_v41, 0.0 }
 0x167   : > { %240 = vadd.xlane.f32.xlu1 %v239_v42 }
 0x1f0   : > { %v238_v49 = vpop.xlane.xlu0 %237 }
 0x1f1   : > { %v242_v50 = vmul.f32 0.03125, %v238_v49 }
 0x1f3   : > { %v244_v51 = vadd.f32 1e-05, %v242_v50 }
 0x1f4   : > { %v241_v52 = vpop.xlane.xlu1 %240 }
 0x1f5   : > { %2798 = vrsqrt.f32 %v244_v51  ;;  %v243_v53 = vmul.f32 0.03125, %v241_v52 }
 0x1f7   : > { %v245_v54 = vadd.f32 1e-05, %v243_v53 }
 0x1f9   : > { %2800 = vrsqrt.f32 %v245_v54 }
 0x1ff   : > { %v2799_v55 = vpop.eup %2798 }
 0x200   : > { %v248_v57 = vmul.f32 %v2799_v55, %v232_v35 }
 0x202   : > { %v254_v59 = vmul.f32 %v2191_v56, %v248_v57 }
 0x203   : > { %v2801_v60 = vpop.eup %2800 }
 0x204   : > { %v249_v62 = vmul.f32 %v2801_v60, %v233_v39  ;;  %v260_v63 = vadd.f32 %v2192_v58, %v254_v59 }
 0x206   : > { %v255_v0 = vmul.f32 %v2191_v56, %v249_v62  ;;  %v2978_v1 = vadd.f32 %v262_v61, %v260_v63 }
 0x208   : > { %v261_v3 = vadd.f32 %v2192_v58, %v255_v0  ;;  %2355 = vmatprep.mubr.msk.f32.mxu1 %vm222_vm0, %v2978_v1 }
 0x20a   : > { %v2982_v4 = vadd.f32 %v263_v2, %v261_v3 }
 0x20c   : > { %2356 = vmatmul.mubr.msk.f32.vlgmr.msra.gmra.mrb[0].mxu1 %vm222_vm0, %v2982_v4 }
 0x2df   : > { %v2357_v6 = vpop.f32.mrb[0].mxu1 }
 0x2e0   : > { %v353_v7 = vadd.f32 %v2357_v6, %v2193_v5  ;;  %v347_v8 = vpop.f32.mrb[1].mxu1 }
 0x2e1   : > { %v348_v9 = vadd.f32 %v2193_v5, %v347_v8 }
 0x2e3   : > { %2362 = vmatprep.mubr.msk.f32.mxu1 %vm362_vm1, %v348_v9  ;;  %v2990_v10 = vpack.i.bf16 %v353_v7, %v348_v9 }
 0x2e5   : > { %2750 = vrot.lane.b32.xlu1 %v2990_v10, %s2886_s15 }
 0x2e9   : > { %2755 = vrot.lane.b32.xlu1 %v2990_v10, %s2887_s16 }
 0x2ed   : > { %557 = vrot.lane.b32.xlu1 %v348_v9, %s2888_s17 }
 0x2f1   : > { %559 = vrot.lane.b32.xlu1 %v353_v7, %s2888_s17 }
 0x357   : > { %v2751_v11 = vpop.permute.xlu1 %2750 }
 0x358   : > { %v2753_v12 = vunpack.i.h.bf16 %v2751_v11  ;;  %v2752_v13 = vunpack.i.l.bf16 %v2751_v11 }
 0x35a   : > { %v2576_v15 = vpack.c.bf16 %v2753_v12, %v2752_v13  ;;  %v769_v12 = vld [vmem:[#allocation2 + $0x70] sm:$0xff]  ;;  %v770_v13 = vld [vmem:[#allocation2 + $0x78] sm:$0xff] }
 0x35b   : > { %v2756_v16 = vpop.permute.xlu1 %2755 }
 0x35c   : > { %v2758_v17 = vunpack.i.h.bf16 %v2756_v16  ;;  %v2757_v18 = vunpack.i.l.bf16 %v2756_v16  ;;  %2578 = vmatprep.subr.msk.bf16.mxu1 %vm3000_vm2, %v2576_v15  ;;  %v771_v16 = vld [vmem:[#allocation2 + $0x80] sm:$0xff] }
 0x35d   : > { %2581 = vmatpush3.bf16.xpose.msk.msra.mxu1 %vm3000_vm2, %v2576_v15  ;;  %v2596_v15 = vpack.c.bf16 %v770_v13, %v769_v12 }
 0x35e   : > { %v2586_v19 = vpack.c.bf16 %v2758_v17, %v2757_v18  ;;  %v772_v17 = vld [vmem:[#allocation2 + $0x88] sm:$0xff] }
 0x35f   : > { %v558_v20 = vpop.permute.xlu1 %557  ;;  %v2600_v18 = vpack.c.bf16 %v772_v17, %v771_v16  ;;  %v2211_v17 = vld [vmem:[%s3203_s2 + $0x8] ss:$0 sm:$0xff] }
 0x360   : > { %2588 = vmatprep.subr.msk.bf16.mxu1 %vm3000_vm2, %v2586_v19 }
 0x363   : > { %v560_v21 = vpop.permute.xlu1 %559 }
 0x364   : > { %2363 = vmatmul.mubr.msk.f32.vlgmr.msra.gmra.mrb[2].mxu1 %vm362_vm1, %v353_v7 }
 0x365   : > { %2591 = vmatpush3.bf16.xpose.msk.msra.mxu1 %vm3000_vm2, %v2586_v19  ;;  %2376 = vmatprep.mubr.msk.f32.mxu1 %vm362_vm1, %v558_v20 }
 0x36c   : > { %2377 = vmatmul.mubr.msk.f32.vlgmr.msra.gmra.mrb[4].mxu1 %vm362_vm1, %v560_v21 }
 0x437   : > { %v2364_v22 = vpop.f32.mrb[2].mxu1 }
 0x438   : > { %v447_v23 = vmul.f32 0.25, %v2364_v22  ;;  %v437_v24 = vpop.f32.mrb[3].mxu1 }
 0x439   : > { %v446_v25 = vmul.f32 0.25, %v437_v24 }
 0x43a   : > { %v451_v26 = vsel %vm362_vm1, %v447_v23, -inf }
 0x43b   : > { %452 = vmax.xlane.f32.xlu1 %v451_v26  ;;  %v448_v27 = vsel %vm362_vm1, %v446_v25, -inf }
 0x43c   : > { %449 = vmax.xlane.f32.xlu0 %v448_v27  ;;  %v2208_v27 = vld [vmem:[%s3203_s2 + $0x7] ss:$0 sm:$0xff] }
 0x43f   : > { %v2378_v28 = vpop.f32.mrb[4].mxu1 }
 0x440   : > { %v639_v29 = vpop.f32.mrb[5].mxu1  ;;  %v649_v31 = vmul.f32 0.25, %v2378_v28 }
 0x441   : > { %v648_v30 = vmul.f32 0.25, %v639_v29 }
 0x442   : > { %v653_v33 = vsel %vm362_vm1, %v649_v31, -inf }
 0x443   : > { %v650_v32 = vsel %vm362_vm1, %v648_v30, -inf }
 0x444   : > { %651 = vmax.xlane.f32.xlu0 %v650_v32 }
 0x448   : > { %654 = vmax.xlane.f32.xlu0 %v653_v33 }
 0x44c   : > { %2765 = vrot.lane.b32.xlu1 %v2990_v10, %s2889_s18 }
 0x4c8   : > { %v453_v34 = vpop.xlane.xlu1 %452 }
 0x4c9   : > { %v455_v35 = vsub.f32 %v447_v23, %v453_v34  ;;  %v450_v36 = vpop.xlane.xlu0 %449 }
 0x4ca   : > { %v454_v37 = vsub.f32 %v446_v25, %v450_v36 }
 0x4cb   : > { %v458_v38 = vmul.f32 1.442695, %v455_v35 }
 0x4cc   : > { %v456_v39 = vmul.f32 1.442695, %v454_v37  ;;  %v2766_v60 = vpop.permute.xlu1 %2765 }
 0x4cd   : > { %2802 = vpow2.f32 %v458_v38  ;;  %v2768_v62 = vunpack.i.h.bf16 %v2766_v60  ;;  %v2767_v63 = vunpack.i.l.bf16 %v2766_v60  ;;  %v1000_v60 = vld [vmem:[#allocation2 + $0x128] sm:$0xff] }
 0x4ce   : > { %2804 = vpow2.f32 %v456_v39 }
 0x4cf   : > { %v2592_v6 = vpack.c.bf16 %v2768_v62, %v2767_v63  ;;  %v1001_v62 = vld [vmem:[#allocation2 + $0x130] sm:$0xff]  ;;  %v1002_v63 = vld [vmem:[#allocation2 + $0x138] sm:$0xff] }
 0x4d1   : > { %v652_v40 = vpop.xlane.xlu0 %651 }
 0x4d2   : > { %v656_v41 = vsub.f32 %v648_v30, %v652_v40 }
 0x4d4   : > { %v658_v45 = vmul.f32 1.442695, %v656_v41 }
 0x4d5   : > { %v655_v42 = vpop.xlane.xlu0 %654 }
 0x4d6   : > { %v657_v43 = vsub.f32 %v649_v31, %v655_v42 }
 0x4d7   : > { %v2803_v44 = vpop.eup %2802 }
 0x4d8   : > { %v660_v46 = vmul.f32 1.442695, %v657_v43  ;;  %v463_v47 = vsel %vm362_vm1, %v2803_v44, 0.0  ;;  %v2805_v48 = vpop.eup %2804 }
 0x4d9   : > { %464 = vadd.xlane.f32.xlu0 %v463_v47  ;;  %v460_v49 = vsel %vm362_vm1, %v2805_v48, 0.0  ;;  %v903_v47 = vld [vmem:[#allocation2 + $0xc0] sm:$0xff] }
 0x4da   : > { %2806 = vpow2.f32 %v660_v46 }
 0x4db   : > { %2808 = vpow2.f32 %v658_v45  ;;  %v902_v45 = vld [vmem:[#allocation2 + $0xb8] sm:$0xff] }
 0x4dd   : > { %461 = vadd.xlane.f32.xlu0 %v460_v49 }
 0x4e4   : > { %v2807_v50 = vpop.eup %2806 }
 0x4e5   : > { %v665_v51 = vsel %vm362_vm1, %v2807_v50, 0.0  ;;  %v2809_v52 = vpop.eup %2808 }
 0x4e6   : > { %666 = vadd.xlane.f32.xlu0 %v665_v51  ;;  %v662_v53 = vsel %vm362_vm1, %v2809_v52, 0.0  ;;  %v994_v51 = vld [vmem:[#allocation2 + $0xf8] sm:$0xff] }
 0x4ea   : > { %663 = vadd.xlane.f32.xlu0 %v662_v53 }
 0x500   : > { %2760 = vrot.lane.b32.xlu0 %v2990_v10, %s2890_s19 }
 0x566   : > { %v465_v54 = vpop.xlane.xlu0 %464 }
 0x56a   : > { %v462_v55 = vpop.xlane.xlu0 %461 }
 0x56b   : > { %2810 = vrcp.f32 %v462_v55 }
 0x56c   : > { %2812 = vrcp.f32 %v465_v54  ;;  %v996_v54 = vld [vmem:[#allocation2 + $0x108] sm:$0xff] }
 0x573   : > { %v667_v56 = vpop.xlane.xlu0 %666 }
 0x575   : > { %v2811_v57 = vpop.eup %2810 }
 0x576   : > { %v468_v58 = vmul.f32 %v2811_v57, %v2805_v48  ;;  %v2813_v5 = vpop.eup %2812  ;;  %v904_v48 = vld [vmem:[#allocation2 + $0xc8] sm:$0xff]  ;;  %v998_v57 = vld [vmem:[#allocation2 + $0x118] sm:$0xff] }
 0x577   : > { %v664_v59 = vpop.xlane.xlu0 %663  ;;  %v469_v8 = vmul.f32 %v2813_v5, %v2803_v44  ;;  %v901_v44 = vld [vmem:[#allocation2 + $0xb0] sm:$0xff]  ;;  %v2608_v49 = vpack.c.bf16 %v904_v48, %v903_v47 }
 0x578   : > { %2814 = vrcp.f32 %v664_v59  ;;  %2369 = vmatprep.mubr.msk.f32.mxu0 %vm362_vm1, %v468_v58  ;;  %v2604_v46 = vpack.c.bf16 %v902_v45, %v901_v44  ;;  %v999_v59 = vld [vmem:[#allocation2 + $0x120] sm:$0xff] }
 0x579   : > { %2816 = vrcp.f32 %v667_v56  ;;  %v997_v56 = vld [vmem:[#allocation2 + $0x110] sm:$0xff] }
 0x57a   : > { %2605 = vmatprep.subr.bf16.mxu1 %v2604_v46  ;;  %v2620_v58 = vpack.c.bf16 %v998_v57, %v997_v56  ;;  %v1131_v56 = vld [vmem:[#allocation2 + $0x50] sm:$0xff]  ;;  %v1132_v57 = vld [vmem:[#allocation2 + $0x58] sm:$0xff] }
 0x57b   : > { %v2761_v61 = vpop.permute.xlu0 %2760  ;;  %2607 = vmatpush3.bf16.msra.mxu1 %v2604_v46 }
 0x57c   : > { %v2763_v0 = vunpack.i.h.bf16 %v2761_v61  ;;  %v2762_v2 = vunpack.i.l.bf16 %v2761_v61  ;;  %2609 = vmatprep.subr.bf16.mxu1 %v2608_v49  ;;  %v2624_v61 = vpack.c.bf16 %v1000_v60, %v999_v59  ;;  %v2645_v59 = vpack.c.bf16 %v1132_v57, %v1131_v56 }
 0x57d   : > { %v2892_v60 = vmov 0.0|0.0  }
 0x57e   : > { %v2582_v3 = vpack.c.bf16 %v2763_v0, %v2762_v2  ;;  %v2628_v0 = vpack.c.bf16 %v1002_v63, %v1001_v62  ;;  %v1003_v2 = vld [vmem:[#allocation2 + $0x140] sm:$0xff]  ;;  %v2894_v62 = vmov 0.0   ;;  %v1209_v63 = vlaneseq }
 0x57f   : > { %2611 = vmatpush3.bf16.msra.mxu1 %v2608_v49 }
 0x580   : > { %2583 = vmatprep.subr.bf16.mxu0 %v2582_v3  ;;  %2644 = vmatprep.subr.bf16.mxu1 %v2892_v60 }
 0x581   : > { %2585 = vmatpush3.bf16.msra.mxu0 %v2582_v3  ;;  %v1004_v3 = vld [vmem:[#allocation2 + $0x148] sm:$0xff] }
 0x582   : > { %v2815_v7 = vpop.eup %2814  ;;  %2593 = vmatprep.subr.bf16.mxu0 %v2592_v6  ;;  %v2632_v5 = vpack.c.bf16 %v1004_v3, %v1003_v2  ;;  %v1135_v2 = vld [vmem:[%s3203_s2 + $0xe] sm:$0x1] }
 0x583   : > { %v2817_v9 = vpop.eup %2816  ;;  %v670_v10 = vmul.f32 %v2815_v7, %v2809_v52  ;;  %v995_v52 = vld [vmem:[#allocation2 + $0x100] sm:$0xff]  ;;  %v1006_v7 = vld [vmem:[#allocation2 + $0x158] sm:$0xff] }
 0x584   : > { %2370 = vmatmul.mubr.msk.f32.vlgmr.msra.gmra.mrb[0].mxu0 %vm362_vm1, %v469_v8  ;;  %v671_v11 = vmul.f32 %v2817_v9, %v2807_v50  ;;  %v993_v50 = vld [vmem:[#allocation2 + $0xf0] sm:$0xff]  ;;  %v2616_v55 = vpack.c.bf16 %v996_v54, %v995_v52  ;;  %v1134_v54 = vld [vmem:[#allocation2 + $0x68] sm:$0xff] }
 0x585   : > { %2595 = vmatpush3.bf16.msra.mxu0 %v2592_v6  ;;  %2383 = vmatprep.mubr.msk.f32.mxu0 %vm362_vm1, %v670_v10  ;;  %v2612_v53 = vpack.c.bf16 %v994_v51, %v993_v50  ;;  %v1005_v6 = vld [vmem:[#allocation2 + $0x150] sm:$0xff] }
 0x586   : > { %2597 = vmatprep.subr.bf16.mxu0 %v2596_v15  ;;  %v2636_v8 = vpack.c.bf16 %v1006_v7, %v1005_v6 }
 0x588   : > { %2384 = vmatmul.mubr.msk.f32.vlgmr.msra.gmra.mrb[2].mxu0 %vm362_vm1, %v671_v11 }
 0x589   : > { %2599 = vmatpush3.bf16.msra.mxu0 %v2596_v15 }
 0x58a   : > { %2601 = vmatprep.subr.bf16.mxu0 %v2600_v18 }
 0x58d   : > { %2603 = vmatpush3.bf16.msra.mxu0 %v2600_v18 }
 0x58e   : > { %2613 = vmatprep.subr.bf16.mxu0 %v2612_v53 }
 0x657   : > { %v2371_v19 = vpop.f32.mrb[0].mxu0 }
 0x658   : > { %v548_v20 = vpop.f32.mrb[1].mxu0 }
 0x65b   : > { %v2385_v21 = vpop.f32.mrb[2].mxu0 }
 0x65c   : > { %v750_v22 = vpop.f32.mrb[3].mxu0 }
 0x65d   : > { %761 = vrot.lane.b32.xlu0 %v750_v22, %s2891_s20 }
 0x661   : > { %763 = vrot.lane.b32.xlu0 %v2385_v21, %s2891_s20  ;;  %v2212_v21 = vld [vmem:[%s3203_s2 + $0x9] ss:$0 sm:$0xff] }
 0x6cf   : > { %v762_v23 = vpop.permute.xlu0 %761 }
 0x6d0   : > { %v767_v24 = vsel %vm362_vm1, %v548_v20, %v762_v23 }
 0x6d1   : > { %2394 = vmatprep.mubr.msk.f32.mxu0 %vm222_vm0, %v767_v24 }
 0x6d3   : > { %v764_v25 = vpop.permute.xlu0 %763 }
 0x6d4   : > { %v768_v26 = vsel %vm362_vm1, %v2371_v19, %v764_v25 }
 0x6d5   : > { %2395 = vmatmul.mubr.msk.f32.vlgmr.msra.gmra.mrb[4].mxu0 %vm222_vm0, %v768_v26  ;;  %v1007_v26 = vld [vmem:[#allocation2 + $0x160] sm:$0xff] }
 0x6d6   : > { %2615 = vmatpush3.bf16.msra.mxu0 %v2612_v53  ;;  %v1133_v53 = vld [vmem:[#allocation2 + $0x60] sm:$0xff] }
 0x6d7   : > { %2617 = vmatprep.subr.bf16.mxu0 %v2616_v55 }
 0x6da   : > { %2619 = vmatpush3.bf16.msra.mxu0 %v2616_v55  ;;  %v2774_v55 = vpack.i.bf16 %v1134_v54, %v1133_v53 }
 0x6db   : > { %2621 = vmatprep.subr.bf16.mxu0 %v2620_v58 }
 0x6de   : > { %2623 = vmatpush3.bf16.msra.mxu0 %v2620_v58  ;;  %v2769_v58 = vpack.i.bf16 %v1132_v57, %v1131_v56 }
 0x6df   : > { %2625 = vmatprep.subr.bf16.mxu0 %v2624_v61 }
 0x6e2   : > { %2627 = vmatpush3.bf16.msra.mxu0 %v2624_v61  ;;  %v2648_v61 = vpack.c.bf16 %v1134_v54, %v1133_v53 }
 0x6e3   : > { %2629 = vmatprep.subr.bf16.mxu0 %v2628_v0 }
 0x6e6   : > { %2631 = vmatpush3.bf16.msra.mxu0 %v2628_v0  ;;  %v1210_v0 = vshrl.u32 %v1209_v63, 7 }
 0x6e7   : > { %2633 = vmatprep.subr.bf16.mxu0 %v2632_v5 }
 0x6e8   : > { %v1211_v3 = vsub.s32 0, %v1210_v0 }
 0x6ea   : > { %2635 = vmatpush3.bf16.msra.mxu0 %v2632_v5  ;;  %v1212_v5 = vrot.slane %v1135_v2, %v1211_v3 }
 0x6eb   : > { %2637 = vmatprep.subr.bf16.mxu0 %v2636_v8 }
 0x6ee   : > { %2639 = vmatpush3.bf16.msra.mxu0 %v2636_v8 }
 0x7a8   : > { %v2396_v28 = vpop.f32.mrb[4].mxu0 }
 0x7a9   : > { %v856_v29 = vadd.f32 %v2396_v28, %v2208_v27  ;;  %v850_v30 = vpop.f32.mrb[5].mxu0 }
 0x7aa   : > { %v851_v31 = vadd.f32 %v2208_v27, %v850_v30  ;;  %v1008_v27 = vld [vmem:[#allocation2 + $0x168] sm:$0xff] }
 0x7ab   : > { %v860_v32 = vadd.f32 %v856_v29, %v2982_v4  ;;  %v2640_v28 = vpack.c.bf16 %v1008_v27, %v1007_v26  ;;  %v2213_v29 = vld [vmem:[%s3203_s2 + $0xa] ss:$0 sm:$0xff] }
 0x7ac   : > { %v859_v33 = vadd.f32 %v851_v31, %v2978_v1 }
 0x7ad   : > { %v866_v34 = vsel %vm222_vm0, %v860_v32, 0.0  ;;  %2641 = vmatprep.subr.bf16.mxu0 %v2640_v28 }
 0x7ae   : > { %867 = vadd.xlane.f32.xlu0 %v866_v34  ;;  %v863_v35 = vsel %vm222_vm0, %v859_v33, 0.0  ;;  %2643 = vmatpush3.bf16.msra.mxu0 %v2640_v28 }
 0x7af   : > { %864 = vadd.xlane.f32.xlu1 %v863_v35  ;;  %2669 = vmatprep.subr.bf16.mxu0 %v2892_v60 }
 0x83b   : > { %v868_v36 = vpop.xlane.xlu0 %867 }
 0x83c   : > { %v870_v37 = vmul.f32 0.03125, %v868_v36  ;;  %v865_v38 = vpop.xlane.xlu1 %864  ;;  %v2216_v36 = vld [vmem:[%s3203_s2 + $0xb] ss:$0 sm:$0xff] }
 0x83d   : > { %v869_v39 = vmul.f32 0.03125, %v865_v38 }
 0x83e   : > { %v3042_v40 = vsub.f32 %v860_v32, %v870_v37 }
 0x83f   : > { %v3044_v41 = vsub.f32 %v859_v33, %v869_v39 }
 0x840   : > { %v874_v42 = vmul.f32 %v3042_v40, %v3042_v40 }
 0x841   : > { %v873_v1 = vmul.f32 %v3044_v41, %v3044_v41 }
 0x842   : > { %v878_v4 = vsel %vm222_vm0, %v874_v42, 0.0 }
 0x843   : > { %879 = vadd.xlane.f32.xlu1 %v878_v4  ;;  %v875_v43 = vsel %vm222_vm0, %v873_v1, 0.0 }
 0x844   : > { %876 = vadd.xlane.f32.xlu0 %v875_v43 }
 0x8d0   : > { %v880_v9 = vpop.xlane.xlu1 %879 }
 0x8d1   : > { %v882_v10 = vmul.f32 0.03125, %v880_v9  ;;  %v877_v11 = vpop.xlane.xlu0 %876 }
 0x8d2   : > { %v881_v12 = vmul.f32 0.03125, %v877_v11 }
 0x8d3   : > { %v884_v13 = vadd.f32 1e-05, %v882_v10 }
 0x8d4   : > { %v883_v15 = vadd.f32 1e-05, %v881_v12 }
 0x8d5   : > { %2818 = vrsqrt.f32 %v884_v13 }
 0x8d6   : > { %2820 = vrsqrt.f32 %v883_v15 }
 0x8df   : > { %v2819_v16 = vpop.eup %2818 }
 0x8e0   : > { %v2821_v18 = vpop.eup %2820  ;;  %v888_v19 = vmul.f32 %v2819_v16, %v3042_v40 }
 0x8e1   : > { %v887_v20 = vmul.f32 %v2821_v18, %v3044_v41 }
 0x8e2   : > { %v894_v22 = vmul.f32 %v2211_v17, %v888_v19  ;;  %v2217_v19 = vld [vmem:[%s3203_s2 + $0xc] ss:$0 sm:$0xff] }
 0x8e3   : > { %v893_v23 = vmul.f32 %v2211_v17, %v887_v20 }
 0x8e4   : > { %v900_v25 = vadd.f32 %v2212_v21, %v894_v22 }
 0x8e5   : > { %v899_v24 = vadd.f32 %v2212_v21, %v893_v23 }
 0x8e7   : > { %2405 = vmatprep.mubr.msk.f32.mxu1 %vm222_vm0, %v899_v24 }
 0x8e8   : > { %2406 = vmatmul.mubr.msk.f32.vlgmr.msra.gmra.mrb[6].mxu1 %vm222_vm0, %v900_v25 }
 0x8e9   : > { %2646 = vmatpush3.bf16.msra.mxu1 %v2645_v59  ;;  %2451 = vmatprep.mubr.msk.f32.mxu1 %vm2893_vm3, %v2894_v62 }
 0x8ea   : > { %2647 = vmatprep.subr.bf16.mxu1 %v2892_v60 }
 0x8ed   : > { %2649 = vmatpush3.bf16.msra.mxu1 %v2648_v61 }
 0x9bb   : > { %v2407_v30 = vpop.f32.mrb[6].mxu1 }
 0x9bc   : > { %v988_v31 = vadd.f32 %v2407_v30, %v2213_v29  ;;  %v982_v32 = vpop.f32.mrb[7].mxu1 }
 0x9bd   : > { %v983_v33 = vadd.f32 %v2213_v29, %v982_v32 }
 0x9be   : > { %v992_v35 = vmax.f32 %v988_v31, 0.0 }
 0x9bf   : > { %v991_v34 = vmax.f32 %v983_v33, 0.0 }
 0x9c1   : > { %2440 = vmatprep.mubr.f32.mxu0 %v991_v34 }
 0x9c2   : > { %2441 = vmatmul.mubr.f32.vlgmr.msra.gmra.mrb[6].mxu0 %v992_v35 }
 0x9c3   : > { %2490 = vmatprep.mubr.msk.f32.mxu0 %vm2893_vm3, %v2894_v62 }
 0xa95   : > { %v2442_v37 = vpop.f32.mrb[6].mxu0 }
 0xa96   : > { %v1086_v38 = vadd.f32 %v2442_v37, %v2216_v36  ;;  %v1080_v39 = vpop.f32.mrb[7].mxu0 }
 0xa97   : > { %v1081_v40 = vadd.f32 %v2216_v36, %v1080_v39 }
 0xa98   : > { %v1090_v41 = vadd.f32 %v1086_v38, %v900_v25 }
 0xa99   : > { %v1089_v42 = vadd.f32 %v1081_v40, %v899_v24  ;;  %v2218_v24 = vld [vmem:[%s3203_s2 + $0xd] ss:$0 sm:$0xff] }
 0xa9a   : > { %v1096_v1 = vsel %vm222_vm0, %v1090_v41, 0.0 }
 0xa9b   : > { %1097 = vadd.xlane.f32.xlu1 %v1096_v1  ;;  %v1093_v4 = vsel %vm222_vm0, %v1089_v42, 0.0 }
 0xa9c   : > { %1094 = vadd.xlane.f32.xlu0 %v1093_v4 }
 0xb28   : > { %v1098_v43 = vpop.xlane.xlu1 %1097 }
 0xb29   : > { %v1100_v44 = vmul.f32 0.03125, %v1098_v43  ;;  %v1095_v45 = vpop.xlane.xlu0 %1094 }
 0xb2a   : > { %v1099_v46 = vmul.f32 0.03125, %v1095_v45 }
 0xb2b   : > { %v1102_v47 = vsub.f32 %v1090_v41, %v1100_v44 }
 0xb2c   : > { %v1101_v48 = vsub.f32 %v1089_v42, %v1099_v46 }
 0xb2d   : > { %v1104_v49 = vmul.f32 %v1102_v47, %v1102_v47 }
 0xb2e   : > { %v1103_v50 = vmul.f32 %v1101_v48, %v1101_v48 }
 0xb2f   : > { %v1108_v51 = vsel %vm222_vm0, %v1104_v49, 0.0 }
 0xb30   : > { %1109 = vadd.xlane.f32.xlu1 %v1108_v51  ;;  %v1105_v52 = vsel %vm222_vm0, %v1103_v50, 0.0 }
 0xb31   : > { %1106 = vadd.xlane.f32.xlu0 %v1105_v52 }
 0xb41   : > { %2775 = vrot.lane.b32.xlu1 %v2774_v55, %s2886_s15 }
 0xb45   : > { %1230 = vrot.lane.b32.xlu1 %v1212_v5, %s2886_s15 }
 0xb47   : > { %2770 = vrot.lane.b32.xlu0 %v2769_v58, %s2886_s15 }
 0xbbd   : > { %v1110_v6 = vpop.xlane.xlu1 %1109 }
 0xbbe   : > { %v1112_v7 = vmul.f32 0.03125, %v1110_v6  ;;  %v1107_v8 = vpop.xlane.xlu0 %1106 }
 0xbbf   : > { %v1111_v9 = vmul.f32 0.03125, %v1107_v8 }
 0xbc0   : > { %v1114_v10 = vadd.f32 1e-05, %v1112_v7 }
 0xbc1   : > { %v1113_v11 = vadd.f32 1e-05, %v1111_v9  ;;  %v2776_v17 = vpop.permute.xlu1 %2775 }
 0xbc2   : > { %v2771_v12 = vpop.permute.xlu0 %2770  ;;  %v2778_v21 = vunpack.i.h.bf16 %v2776_v17  ;;  %v2777_v22 = vunpack.i.l.bf16 %v2776_v17 }
 0xbc3   : > { %2822 = vrsqrt.f32 %v1113_v11  ;;  %v2773_v13 = vunpack.i.h.bf16 %v2771_v12  ;;  %v2772_v15 = vunpack.i.l.bf16 %v2771_v12 }
 0xbc4   : > { %2824 = vrsqrt.f32 %v1114_v10  ;;  %v2654_v27 = vpack.c.bf16 %v2778_v21, %v2777_v22  ;;  %v1663_v22 = vld [vmem:[#allocation2 + $0xa8] sm:$0xff] }
 0xbc5   : > { %v2650_v16 = vpack.c.bf16 %v2773_v13, %v2772_v15  ;;  %v1231_v33 = vpop.permute.xlu1 %1230 }
 0xbc7   : > { %2651 = vmatprep.subr.bf16.mxu1 %v2650_v16 }
 0xbcd   : > { %v2823_v18 = vpop.eup %2822 }
 0xbce   : > { %v1117_v20 = vmul.f32 %v2823_v18, %v1101_v48  ;;  %v2825_v23 = vpop.eup %2824  ;;  %v1660_v18 = vld [vmem:[#allocation2 + $0x90] sm:$0xff] }
 0xbcf   : > { %v1118_v26 = vmul.f32 %v2825_v23, %v1102_v47 }
 0xbd0   : > { %v1123_v25 = vmul.f32 %v2217_v19, %v1117_v20  ;;  %v1662_v20 = vld [vmem:[#allocation2 + $0xa0] sm:$0xff] }
 0xbd1   : > { %v1124_v29 = vmul.f32 %v2217_v19, %v1118_v26  ;;  %v1661_v19 = vld [vmem:[#allocation2 + $0x98] sm:$0xff]  ;;  %v2676_v23 = vpack.c.bf16 %v1663_v22, %v1662_v20 }
 0xbd2   : > { %v3091_v28 = vadd.f32 %v2218_v24, %v1123_v25  ;;  %v2673_v21 = vpack.c.bf16 %v1661_v19, %v1660_v18 }
 0xbd3   : > { %v1130_v30 = vadd.f32 %v2218_v24, %v1124_v29  ;;  %v1664_v29 = vld [vmem:[%s3203_s2 + $0xf] sm:$0x1] }
 0xbd4   : > { %2452 = vmatmul.mubr.msk.f32.vlgmr.msra.gmra.mrb[8].mxu1 %vm222_vm0, %v3091_v28 }
 0xbd5   : > { %2653 = vmatpush3.bf16.msra.mxu1 %v2650_v16  ;;  %2462 = vmatprep.mubr.msk.f32.mxu1 %vm222_vm0, %v3091_v28 }
 0xbd6   : > { %2655 = vmatprep.subr.bf16.mxu1 %v2654_v27 }
 0xbd9   : > { %2657 = vmatpush3.bf16.msra.mxu1 %v2654_v27 }
 0xbda   : > { %2658 = vmatprep.subr.bf16.mxu1 %v2892_v60 }
 0xbdc   : > { %2463 = vmatmul.mubr.msk.f32.vlgmr.msra.gmra.mrb[10].mxu1 %vm222_vm0, %v1130_v30 }
 0xbdd   : > { %2469 = vmatprep.mubr.msk.f32.mxu1 %vm2893_vm3, %v2894_v62 }
 0xca7   : > { %v1205_v31 = vpop.f32.mrb[8].mxu1 }
 0xca8   : > { %v2453_v32 = vpop.f32.mrb[9].mxu1  ;;  %v1206_v40 = vadd.f32 %v1205_v31, %v1135_v2 }
 0xcaf   : > { %v2464_v34 = vpop.f32.mrb[10].mxu1 }
 0xcb0   : > { %v1308_v35 = vadd.f32 %v2464_v34, %v1231_v33  ;;  %v1302_v36 = vpop.f32.mrb[11].mxu1 }
 0xcb1   : > { %v1303_v37 = vadd.f32 %v1302_v36, %v1231_v33 }
 0xcb3   : > { %v2659_v38 = vpack.c.bf16 %v1308_v35, %v1303_v37  ;;  %v2779_v39 = vpack.i.bf16 %v1308_v35, %v1303_v37 }
 0xcb5   : > { %2661 = vmatpush3.bf16.xpose.msk.msra.mxu1 %vm3000_vm2, %v2659_v38 }
 0xcb6   : > { %2662 = vmatprep.subr.bf16.mxu1 %v2892_v60 }
 0xcbc   : > { %2470 = vmatmul.mubr.msk.f32.vlgmr.msra.gmra.mrb[12].mxu1 %vm362_vm1, %v1206_v40 }
 0xcbd   : > { %2476 = vmatprep.mubr.msk.f32.mxu1 %vm2893_vm3, %v2894_v62 }
 0xd8f   : > { %v1386_v41 = vpop.f32.mrb[12].mxu1 }
 0xd90   : > { %v1390_v42 = vmul.f32 0.25, %v1386_v41  ;;  %v2471_v1 = vpop.f32.mrb[13].mxu1  ;;  %v1758_v41 = vld [vmem:[#allocation2 + $0xd8] sm:$0xff] }
 0xd91   : > { %v1759_v1 = vld [vmem:[#allocation2 + $0xe0] sm:$0xff] }
 0xd92   : > { %v1392_v4 = vsel %vm1391_vm4, %v1390_v42, -inf }
 0xd93   : > { %1393 = vmax.xlane.f32.xlu0 %v1392_v4  ;;  %v1760_v4 = vld [vmem:[#allocation2 + $0xe8] sm:$0xff] }
 0xda9   : > { %2780 = vrot.lane.b32.xlu0 %v2779_v39, %s2886_s15 }
 0xdad   : > { %1482 = vrot.lane.b32.xlu0 %v1206_v40, %s2888_s17  ;;  %v1757_v40 = vld [vmem:[#allocation2 + $0xd0] sm:$0xff] }
 0xe20   : > { %v1394_v43 = vpop.xlane.xlu0 %1393 }
 0xe21   : > { %v1395_v44 = vsub.f32 %v1390_v42, %v1394_v43  ;;  %v2679_v42 = vpack.c.bf16 %v1758_v41, %v1757_v40  ;;  %v2682_v43 = vpack.c.bf16 %v1760_v4, %v1759_v1 }
 0xe23   : > { %v1396_v45 = vmul.f32 1.442695, %v1395_v44  ;;  %v1837_v44 = vld [vmem:[#allocation2 + $0x178] sm:$0xff] }
 0xe24   : > { %v2781_v46 = vpop.permute.xlu0 %2780 }
 0xe25   : > { %2826 = vpow2.f32 %v1396_v45  ;;  %v2783_v47 = vunpack.i.h.bf16 %v2781_v46  ;;  %v2782_v48 = vunpack.i.l.bf16 %v2781_v46  ;;  %v1838_v45 = vld [vmem:[#allocation2 + $0x180] sm:$0xff] }
 0xe27   : > { %v2663_v49 = vpack.c.bf16 %v2783_v47, %v2782_v48  ;;  %v1839_v47 = vld [vmem:[#allocation2 + $0x188] sm:$0xff] }
 0xe28   : > { %v1483_v59 = vpop.permute.xlu0 %1482  ;;  %v2688_v48 = vpack.c.bf16 %v1839_v47, %v1838_v45  ;;  %v1958_v45 = vld [vmem:[#allocation2 + $0x1f0] sm:$0xff] }
 0xe29   : > { %2664 = vmatpush3.bf16.msra.mxu1 %v2663_v49  ;;  %v1840_v49 = vld [vmem:[#allocation2 + $0x190] sm:$0xff] }
 0xe2a   : > { %2665 = vmatprep.subr.bf16.mxu1 %v2892_v60 }
 0xe2f   : > { %v2827_v50 = vpop.eup %2826 }
 0xe30   : > { %v1398_v51 = vsel %vm1391_vm4, %v2827_v50, 0.0 }
 0xe31   : > { %1399 = vadd.xlane.f32.xlu1 %v1398_v51 }
 0xe42   : > { %2785 = vrot.lane.b32.xlu1 %v2779_v39, %s2888_s17 }
 0xebe   : > { %v1400_v52 = vpop.xlane.xlu1 %1399 }
 0xebf   : > { %2828 = vrcp.f32 %v1400_v52  ;;  %v1842_v52 = vld [vmem:[#allocation2 + $0x1a0] sm:$0xff] }
 0xec2   : > { %v2786_v53 = vpop.permute.xlu1 %2785 }
 0xec3   : > { %v2788_v54 = vunpack.i.h.bf16 %v2786_v53  ;;  %v2787_v55 = vunpack.i.l.bf16 %v2786_v53  ;;  %v1843_v53 = vld [vmem:[#allocation2 + $0x1a8] sm:$0xff] }
 0xec5   : > { %v2666_v58 = vpack.c.bf16 %v2788_v54, %v2787_v55  ;;  %v2694_v54 = vpack.c.bf16 %v1843_v53, %v1842_v52  ;;  %v1844_v55 = vld [vmem:[#allocation2 + $0x1b0] sm:$0xff] }
 0xec9   : > { %v2829_v56 = vpop.eup %2828 }
 0xeca   : > { %v1402_v57 = vmul.f32 %v2829_v56, %v2827_v50  ;;  %v1841_v50 = vld [vmem:[#allocation2 + $0x198] sm:$0xff] }
 0xecb   : > { %v2691_v51 = vpack.c.bf16 %v1841_v50, %v1840_v49  ;;  %v1845_v56 = vld [vmem:[#allocation2 + $0x1b8] sm:$0xff]  ;;  %v1961_v49 = vld [vmem:[#allocation2 + $0x208] sm:$0xff] }
 0xecc   : > { %2477 = vmatmul.mubr.msk.f32.vlgmr.msra.gmra.mrb[14].mxu1 %vm362_vm1, %v1402_v57  ;;  %v2697_v57 = vpack.c.bf16 %v1845_v56, %v1844_v55  ;;  %v1941_v55 = vld [vmem:[%s3203_s2 + $0x2] sm:$0x1] }
 0xecd   : > { %2668 = vmatpush3.bf16.xpose.msk.msra.mxu1 %vm3000_vm2, %v2666_v58  ;;  %2483 = vmatprep.mubr.msk.f32.mxu1 %vm2893_vm3, %v2894_v62  ;;  %v1846_v58 = vld [vmem:[#allocation2 + $0x1c0] sm:$0xff] }
 0xece   : > { %2678 = vmatprep.subr.bf16.mxu1 %v2892_v60 }
 0xed4   : > { %2484 = vmatmul.mubr.msk.f32.vlgmr.msra.gmra.mrb[16].mxu1 %vm362_vm1, %v1483_v59  ;;  %v1847_v59 = vld [vmem:[#allocation2 + $0x1c8] sm:$0xff] }
 0xed5   : > { %2512 = vmatprep.mubr.msk.f32.mxu1 %vm2893_vm3, %v2894_v62  ;;  %2680 = vmatpush3.bf16.msra.mxu1 %v2679_v42 }
 0xed6   : > { %2681 = vmatprep.subr.bf16.mxu1 %v2892_v60 }
 0xed9   : > { %2683 = vmatpush3.bf16.msra.mxu1 %v2682_v43 }
 0xeda   : > { %2708 = vmatprep.subr.bf16.mxu1 %v2892_v60 }
 0xf9f   : > { %v1478_v61 = vpop.f32.mrb[14].mxu1 }
 0xfa0   : > { %v2478_v63 = vpop.f32.mrb[15].mxu1 }
 0xfa1   : > { %v1848_v63 = vld [vmem:[#allocation2 + $0x1d0] sm:$0xff] }
 0xfa7   : > { %v1560_v0 = vpop.f32.mrb[16].mxu1 }
 0xfa8   : > { %v1564_v2 = vmul.f32 0.25, %v1560_v0  ;;  %v2485_v3 = vpop.f32.mrb[17].mxu1  ;;  %v1849_v0 = vld [vmem:[#allocation2 + $0x1d8] sm:$0xff] }
 0xfaa   : > { %v1565_v5 = vsel %vm1391_vm4, %v1564_v2, -inf }
 0xfab   : > { %1566 = vmax.xlane.f32.xlu1 %v1565_v5 }
0x1038   : > { %v1567_v14 = vpop.xlane.xlu1 %1566 }
0x1039   : > { %v1568_v6 = vsub.f32 %v1564_v2, %v1567_v14  ;;  %v2703_v2 = vpack.c.bf16 %v1849_v0, %v1848_v63  ;;  %v1962_v0 = vld [vmem:[%s3203_s2 + $0x4] sm:$0x1] }
0x103b   : > { %v1569_v7 = vmul.f32 1.442695, %v1568_v6 }
0x103d   : > { %2830 = vpow2.f32 %v1569_v7  ;;  %v1739_v7 = vld [vmem:[%s3203_s2 + $0x10] sm:$0x1] }
0x1047   : > { %v2831_v8 = vpop.eup %2830 }
0x1048   : > { %v1571_v9 = vsel %vm1391_vm4, %v2831_v8, 0.0 }
0x1049   : > { %1572 = vadd.xlane.f32.xlu0 %v1571_v9  ;;  %v1740_v9 = vld [vmem:[%s3203_s2 + $0x11] sm:$0x1] }
0x105f   : > { %2790 = vrot.lane.b32.xlu0 %v2779_v39, %s2887_s16 }
0x10d6   : > { %v1573_v10 = vpop.xlane.xlu0 %1572 }
0x10d7   : > { %2832 = vrcp.f32 %v1573_v10 }
0x10da   : > { %v2791_v11 = vpop.permute.xlu0 %2790 }
0x10db   : > { %v2793_v12 = vunpack.i.h.bf16 %v2791_v11  ;;  %v2792_v13 = vunpack.i.l.bf16 %v2791_v11 }
0x10dd   : > { %v2670_v15 = vpack.c.bf16 %v2793_v12, %v2792_v13  ;;  %v1850_v12 = vld [vmem:[#allocation2 + $0x1e0] sm:$0xff]  ;;  %v1851_v13 = vld [vmem:[#allocation2 + $0x1e8] sm:$0xff] }
0x10df   : > { %2671 = vmatpush3.bf16.msra.mxu0 %v2670_v15  ;;  %v2706_v15 = vpack.c.bf16 %v1851_v13, %v1850_v12  ;;  %v2047_v13 = vld [vmem:[%s3203_s2 + $0x5] sm:$0x1] }
0x10e0   : > { %2672 = vmatprep.subr.bf16.mxu0 %v2892_v60 }
0x10e1   : > { %v2833_v16 = vpop.eup %2832 }
0x10e2   : > { %v1575_v17 = vmul.f32 %v2833_v16, %v2831_v8  ;;  %v1761_v16 = vld [vmem:[%s3203_s2 + $0x12] sm:$0x1] }
0x10e4   : > { %2491 = vmatmul.mubr.msk.f32.vlgmr.msra.gmra.mrb[8].mxu0 %vm362_vm1, %v1575_v17 }
0x10e5   : > { %2501 = vmatprep.mubr.msk.f32.mxu0 %vm2893_vm3, %v2894_v62  ;;  %2674 = vmatpush3.bf16.msra.mxu0 %v2673_v21  ;;  %v1852_v21 = vld [vmem:[%s3203_s2 + $0x13] sm:$0x1] }
0x10e6   : > { %2675 = vmatprep.subr.bf16.mxu0 %v2892_v60 }
0x10e9   : > { %2677 = vmatpush3.bf16.msra.mxu0 %v2676_v23 }
0x10ea   : > { %2684 = vmatprep.subr.bf16.mxu0 %v2892_v60 }
0x11b7   : > { %v1651_v24 = vpop.f32.mrb[8].mxu0 }
0x11b8   : > { %1656 = vrot.lane.b32.xlu1 %v1651_v24, %s2891_s20  ;;  %v2492_v25 = vpop.f32.mrb[9].mxu0 }
0x122a   : > { %v1657_v26 = vpop.permute.xlu1 %1656 }
0x122b   : > { %v1659_v27 = vsel %vm362_vm1, %v1478_v61, %v1657_v26  ;;  %v2700_v61 = vpack.c.bf16 %v1847_v59, %v1846_v58 }
0x122c   : > { %2502 = vmatmul.mubr.msk.f32.vlgmr.msra.gmra.mrb[10].mxu0 %vm222_vm0, %v1659_v27 }
0x122d   : > { %2547 = vmatprep.mubr.msk.f32.mxu0 %vm2893_vm3, %v2894_v62 }
0x12ff   : > { %v1734_v30 = vpop.f32.mrb[10].mxu0 }
0x1300   : > { %v1735_v31 = vadd.f32 %v1734_v30, %v1664_v29  ;;  %v2503_v32 = vpop.f32.mrb[11].mxu0 }
0x1302   : > { %v1738_v33 = vadd.f32 %v1735_v31, %v3091_v28  ;;  %v1836_v28 = vld [vmem:[#allocation2 + $0x170] sm:$0xff] }
0x1303   : > { %v2685_v46 = vpack.c.bf16 %v1837_v44, %v1836_v28 }
0x1304   : > { %v1742_v34 = vsel %vm1741_vm5, %v1738_v33, 0.0 }
0x1305   : > { %1743 = vadd.xlane.f32.xlu1 %v1742_v34  ;;  %2686 = vmatpush3.bf16.msra.mxu0 %v2685_v46  ;;  %v1959_v46 = vld [vmem:[#allocation2 + $0x1f8] sm:$0xff] }
0x1306   : > { %2687 = vmatprep.subr.bf16.mxu0 %v2892_v60  ;;  %v2709_v47 = vpack.c.bf16 %v1959_v46, %v1958_v45 }
0x1309   : > { %2689 = vmatpush3.bf16.msra.mxu0 %v2688_v48  ;;  %v1960_v48 = vld [vmem:[#allocation2 + $0x200] sm:$0xff] }
0x130a   : > { %2690 = vmatprep.subr.bf16.mxu0 %v2892_v60  ;;  %v2712_v50 = vpack.c.bf16 %v1961_v49, %v1960_v48 }
0x130d   : > { %2692 = vmatpush3.bf16.msra.mxu0 %v2691_v51 }
0x130e   : > { %2693 = vmatprep.subr.bf16.mxu0 %v2892_v60 }
0x1311   : > { %2695 = vmatpush3.bf16.msra.mxu0 %v2694_v54 }
0x1312   : > { %2696 = vmatprep.subr.bf16.mxu0 %v2892_v60 }
0x1315   : > { %2698 = vmatpush3.bf16.msra.mxu0 %v2697_v57  ;;  %v1942_v57 = vld [vmem:[%s3203_s2 + $0x3] sm:$0x1] }
0x1316   : > { %2699 = vmatprep.subr.bf16.mxu0 %v2892_v60 }
0x1319   : > { %2701 = vmatpush3.bf16.msra.mxu0 %v2700_v61  ;;  %v2046_v61 = vld [vmem:[#allocation2 + $0x218] sm:$0xff] }
0x131a   : > { %2702 = vmatprep.subr.bf16.mxu0 %v2892_v60 }
0x131d   : > { %2704 = vmatpush3.bf16.msra.mxu0 %v2703_v2 }
0x131e   : > { %2705 = vmatprep.subr.bf16.mxu0 %v2892_v60 }
0x1321   : > { %2707 = vmatpush3.bf16.msra.mxu0 %v2706_v15 }
0x1392   : > { %v1744_v35 = vpop.xlane.xlu1 %1743 }
0x1393   : > { %v1745_v36 = vmul.f32 0.03125, %v1744_v35 }
0x1395   : > { %v1746_v37 = vsub.f32 %v1738_v33, %v1745_v36 }
0x1397   : > { %v1747_v38 = vmul.f32 %v1746_v37, %v1746_v37 }
0x1399   : > { %v1748_v39 = vsel %vm1741_vm5, %v1747_v38, 0.0 }
0x139a   : > { %1749 = vadd.xlane.f32.xlu0 %v1748_v39  ;;  %v1925_v39 = vld [vmem:[%s3203_s2 + $0x15] sm:$0x1] }
0x1427   : > { %v1750_v3 = vpop.xlane.xlu0 %1749 }
0x1428   : > { %v1751_v5 = vmul.f32 0.03125, %v1750_v3 }
0x142a   : > { %v1752_v14 = vadd.f32 1e-05, %v1751_v5 }
0x142c   : > { %2834 = vrsqrt.f32 %v1752_v14 }
0x1436   : > { %v2835_v6 = vpop.eup %2834 }
0x1437   : > { %v1754_v8 = vmul.f32 %v2835_v6, %v1746_v37  ;;  %v1924_v37 = vld [vmem:[%s3203_s2 + $0x14] sm:$0x1] }
0x1439   : > { %v1755_v10 = vmul.f32 %v1754_v8, %v1739_v7 }
0x143b   : > { %v1756_v11 = vadd.f32 %v1755_v10, %v1740_v9 }
0x143d   : > { %2513 = vmatmul.mubr.msk.f32.vlgmr.msra.gmra.mrb[18].mxu1 %vm222_vm0, %v1756_v11 }
0x143e   : > { %2558 = vmatprep.mubr.msk.f32.mxu1 %vm2893_vm3, %v2894_v62  ;;  %2710 = vmatpush3.bf16.msra.mxu1 %v2709_v47 }
0x143f   : > { %2711 = vmatprep.subr.bf16.mxu1 %v2892_v60 }
0x1442   : > { %2713 = vmatpush3.bf16.msra.mxu1 %v2712_v50 }
0x1443   : > { %2714 = vmatprep.subr.bf16.mxu1 %v2892_v60  ;;  %v2045_v60 = vld [vmem:[#allocation2 + $0x210] sm:$0xff] }
0x1444   : > { %v2715_v63 = vpack.c.bf16 %v2046_v61, %v2045_v60 }
0x1510   : > { %v1831_v17 = vpop.f32.mrb[18].mxu1 }
0x1511   : > { %v1832_v18 = vadd.f32 %v1831_v17, %v1761_v16  ;;  %v2514_v19 = vpop.f32.mrb[19].mxu1 }
0x1513   : > { %v1835_v20 = vmax.f32 %v1832_v18, 0.0 }
0x1515   : > { %2548 = vmatmul.mubr.f32.vlgmr.msra.gmra.mrb[12].mxu0 %v1835_v20 }
0x15e8   : > { %v1919_v22 = vpop.f32.mrb[12].mxu0 }
0x15e9   : > { %v1920_v23 = vadd.f32 %v1919_v22, %v1852_v21  ;;  %v2549_v24 = vpop.f32.mrb[13].mxu0 }
0x15eb   : > { %v1923_v25 = vadd.f32 %v1920_v23, %v1756_v11 }
0x15ed   : > { %v1926_v26 = vsel %vm1741_vm5, %v1923_v25, 0.0 }
0x15ee   : > { %1927 = vadd.xlane.f32.xlu0 %v1926_v26 }
0x167b   : > { %v1928_v27 = vpop.xlane.xlu0 %1927 }
0x167c   : > { %v1929_v29 = vmul.f32 0.03125, %v1928_v27 }
0x167e   : > { %v1930_v30 = vsub.f32 %v1923_v25, %v1929_v29 }
0x1680   : > { %v1931_v31 = vmul.f32 %v1930_v30, %v1930_v30 }
0x1682   : > { %v1932_v32 = vsel %vm1741_vm5, %v1931_v31, 0.0 }
0x1683   : > { %1933 = vadd.xlane.f32.xlu1 %v1932_v32 }
0x1710   : > { %v1934_v33 = vpop.xlane.xlu1 %1933 }
0x1711   : > { %v1935_v34 = vmul.f32 0.03125, %v1934_v33 }
0x1713   : > { %v1936_v35 = vadd.f32 1e-05, %v1935_v34 }
0x1715   : > { %2836 = vrsqrt.f32 %v1936_v35 }
0x171f   : > { %v2837_v36 = vpop.eup %2836 }
0x1720   : > { %v1938_v38 = vmul.f32 %v2837_v36, %v1930_v30 }
0x1722   : > { %v1939_v40 = vmul.f32 %v1938_v38, %v1924_v37 }
0x1724   : > { %v1940_v41 = vadd.f32 %v1939_v40, %v1925_v39 }
0x1726   : > { %v1943_v42 = vsel %vm1741_vm5, %v1940_v41, 0.0 }
0x1727   : > { %1944 = vadd.xlane.f32.xlu0 %v1943_v42 }
0x17b4   : > { %v1945_v1 = vpop.xlane.xlu0 %1944 }
0x17b5   : > { %v1946_v4 = vmul.f32 0.03125, %v1945_v1 }
0x17b7   : > { %v1947_v43 = vsub.f32 %v1940_v41, %v1946_v4 }
0x17b9   : > { %v1948_v28 = vmul.f32 %v1947_v43, %v1947_v43 }
0x17bb   : > { %v1949_v44 = vsel %vm1741_vm5, %v1948_v28, 0.0 }
0x17bc   : > { %1950 = vadd.xlane.f32.xlu1 %v1949_v44 }
0x1849   : > { %v1951_v51 = vpop.xlane.xlu1 %1950 }
0x184a   : > { %v1952_v52 = vmul.f32 0.03125, %v1951_v51 }
0x184c   : > { %v1953_v53 = vadd.f32 1e-05, %v1952_v52 }
0x184e   : > { %2838 = vrsqrt.f32 %v1953_v53 }
0x1858   : > { %v2839_v54 = vpop.eup %2838 }
0x1859   : > { %v1955_v56 = vmul.f32 %v2839_v54, %v1947_v43 }
0x185b   : > { %v1956_v58 = vmul.f32 %v1955_v56, %v1941_v55 }
0x185d   : > { %v1957_v59 = vadd.f32 %v1956_v58, %v1942_v57 }
0x185f   : > { %2559 = vmatmul.mubr.msk.f32.vlgmr.msra.gmra.mrb[20].mxu1 %vm222_vm0, %v1957_v59 }
0x1860   : > { %2565 = vmatprep.mubr.msk.f32.mxu1 %vm2893_vm3, %v2894_v62  ;;  %2716 = vmatpush3.bf16.msra.mxu1 %v2715_v63 }
0x1932   : > { %v2032_v2 = vpop.f32.mrb[20].mxu1 }
0x1933   : > { %v2033_v3 = vadd.f32 %v2032_v2, %v1962_v0  ;;  %v2560_v5 = vpop.f32.mrb[21].mxu1 }
0x1935   : > { %v2037_v14 = vmul.f32 0.044715, %v2033_v3  ;;  %v2036_v62 = vmul.f32 0.5, %v2033_v3 }
0x1937   : > { %v2038_v6 = vmul.f32 %v2037_v14, %v2033_v3 }
0x1939   : > { %v2039_v7 = vmul.f32 %v2038_v6, %v2033_v3 }
0x193b   : > { %v2040_v8 = vadd.f32 %v2039_v7, %v2033_v3 }
0x193d   : > { %v2041_v9 = vmul.f32 0.7978846, %v2040_v8 }
0x193f   : > { %2840 = vtanh.f32 %v2041_v9 }
0x1949   : > { %v2841_v10 = vpop.eup %2840 }
0x194a   : > { %v2043_v11 = vadd.f32 1.0, %v2841_v10 }
0x194c   : > { %v2044_v12 = vmul.f32 %v2043_v11, %v2036_v62 }
0x194e   : > { %2566 = vmatmul.mubr.msk.f32.vlgmr.msra.gmra.mrb[22].mxu1 %vm362_vm1, %v2044_v12 }
0x1a21   : > { %v2117_v15 = vpop.f32.mrb[22].mxu1 }
0x1a22   : > { %v2118_v16 = vadd.f32 %v2117_v15, %v2047_v13  ;;  %v2567_v17 = vpop.f32.mrb[23].mxu1 }
0x1a24   : > { %2122 = vst.msk [vmem:[%s181_s9] sm:$0x1] %vm2121_vm6, %v2118_v16 }
0x1a25 PF: > { %s14_s12 = sadd.s32 1, %s2880_s12  }
0x1a26   : > { %p11_p3 = scmp.ge.s32.totalorder %s14_s12, 4  }
0x1a28   :  { %13 = sbr.rel (!%p11_p3) target bundleno = 1 (0x1), region = 67 }
0x1a2f   :  { %2140 = vsyncpa [#allocation3], 1 }
0x1a30   :  { %2142 = vsyncpa [#allocation3 + $0x1], 1 }

</bundles_post_ra>
